<compile_context>
chip_gen: v7x
topology: tpu7x:2x2x1
jax: 0.10.0
libtpu: 0.0.40
codegen_flags: <defaults>
</compile_context>

<pallas_src>
import jax
import jax.numpy as jnp
from jax import lax
from jax.experimental import pallas as pl
from jax.experimental.pallas import tpu as pltpu

EPS = 1e-12        # torch.nn.functional.normalize default eps
NEG_BIAS = -1e30   # softmax bias for lane-padded clusters (exp underflows to 0)


def _l2normalize(v, axis=-1):
    # v / max(||v||, EPS)  ==  v * rsqrt(max(sum(v*v), EPS^2))
    ss = jnp.sum(v * v, axis=axis, keepdims=True)
    return v * lax.rsqrt(jnp.maximum(ss, EPS * EPS))


# --------------------------------------------------------------------------
# Stage 1: per-image NetVLAD descriptor
# --------------------------------------------------------------------------
def descriptor_kernel(x_ref, wb_ref, bb_ref, wsa_ref, bsa_ref, cent_ref,
                      desc_ref):
    x = x_ref[0]                                              # (P, Cin) bf16

    # base_model stand-in: 1x1 conv + ReLU -> (P, D)
    feat = jnp.dot(x, wb_ref[...], preferred_element_type=jnp.float32)
    feat = jnp.maximum(feat + bb_ref[...], 0.0)               # (P, D) f32

    # per-pixel L2 normalization (NetVLAD input norm)
    featn = _l2normalize(feat, axis=-1)
    featn_bf = featn.astype(jnp.bfloat16)

    # soft assignment over lane-padded clusters (pad bias -> weight exactly 0)
    logits = jnp.dot(featn_bf, wsa_ref[...],
                     preferred_element_type=jnp.float32) + bsa_ref[...]
    logits = logits - jnp.max(logits, axis=-1, keepdims=True)
    e = jnp.exp(logits)
    a = e / jnp.sum(e, axis=-1, keepdims=True)                # exact divide (f32)

    # vlad[k,c] = sum_p a[p,k]*featn[p,c] - (sum_p a[p,k]) * cent[k,c]
    a_bf = a.astype(jnp.bfloat16)
    vlad = lax.dot_general(a_bf, featn_bf, (((0,), (0,)), ((), ())),
                           preferred_element_type=jnp.float32)   # (Kp, D)

    # s_k = sum_p a[p,k] without an MXU ones-matmul: cross-sublane reduce to a
    # (1, Kp) row, then diagonal-select into a (Kp, 1) column (XLU/VPU only).
    kp = vlad.shape[0]
    srow = jnp.sum(a, axis=0, keepdims=True)                  # (1, Kp) f32
    row_id = lax.broadcasted_iota(jnp.int32, (kp, kp), 0)
    col_id = lax.broadcasted_iota(jnp.int32, (kp, kp), 1)
    s_col = jnp.sum(jnp.where(row_id == col_id, srow, 0.0),
                    axis=1, keepdims=True)                    # (Kp, 1)
    vlad = vlad - cent_ref[...] * s_col

    # intra-cluster L2 norm; then the global flat L2 norm is just a scalar
    # scale (no (K,D)->(1,KD) relayout in-kernel).
    vlad = _l2normalize(vlad, axis=-1)
    gss = jnp.sum(jnp.sum(vlad * vlad, axis=-1, keepdims=True),
                  axis=0, keepdims=True)                      # (1, 1)
    gscale = lax.rsqrt(jnp.maximum(gss, EPS * EPS))

    k_real = desc_ref.shape[1]                                # unpadded K
    desc_ref[0] = (vlad[:k_real] * gscale).astype(desc_ref.dtype)


# --------------------------------------------------------------------------
# Stage 2: batched PCA GEMM over OUT tiles
# --------------------------------------------------------------------------
def pca_kernel(desc_ref, wp_ref, bp_ref, out_ref):
    # desc_ref: (N, KD) bf16, resident across OUT tiles (index map constant)
    # wp_ref  : (1, KD, tn) bf16, contiguous pre-tiled block (streamed)
    out_ref[...] = (jnp.dot(desc_ref[...], wp_ref[0],
                            preferred_element_type=jnp.float32)
                    + bp_ref[...])


# --------------------------------------------------------------------------
# Generation-aware tiling helpers
# --------------------------------------------------------------------------
def _vmem_capacity_bytes():
    try:
        return int(pltpu.get_tpu_info().vmem_capacity_bytes)
    except Exception:
        return 64 << 20          # conservative fallback: v7x per-core VMEM


def _pick_out_tile(kd_rows, out_dim, vmem_cap):
    """Largest OUT tile (multiple of 128 dividing OUT) whose double-buffered
    bf16 weight slab fits a generation-dependent budget."""
    if out_dim % 128 != 0:
        return out_dim                       # block must equal the full dim
    budget = (80 << 20) if vmem_cap >= (96 << 20) else (24 << 20)
    tn = (budget // (2 * 2 * kd_rows)) // 128 * 128
    tn = int(min(out_dim, max(128, tn)))
    while out_dim % tn:
        tn -= 128
    return tn


def _clamp_vmem_limit(est_bytes, vmem_cap):
    cap = vmem_cap - (12 << 20)              # compiler scratch / sem headroom
    return int(min(cap, max(32 << 20, 2 * est_bytes)))


# --------------------------------------------------------------------------
# Wrapper
# --------------------------------------------------------------------------
def embednet_pca_forward(x_nchw, params):
    wb, bb, wsa, bsa, cent, wp, bp = params
    N, Cin, H, W = x_nchw.shape
    P = H * W
    D = wb.shape[1]
    K = wsa.shape[1]
    KD, OUT = wp.shape
    assert KD == K * D

    vmem_cap = _vmem_capacity_bytes()
    bf16, f32 = 2, 4

    # ---- stage 1 inputs -----------------------------------------------------
    # One-time NCHW -> (N, P, Cin) relayout in XLA (amortized over the batch).
    x_pc = jnp.transpose(x_nchw.reshape(N, Cin, P), (0, 2, 1)).astype(jnp.bfloat16)

    # Lane-pad num_clusters to a multiple of 128 (padded assignments -> 0).
    Kp = ((K + 127) // 128) * 128
    wb_bf = wb.astype(jnp.bfloat16)
    wsa_p = jnp.zeros((D, Kp), jnp.float32).at[:, :K].set(wsa).astype(jnp.bfloat16)
    bsa_p = jnp.full((1, Kp), NEG_BIAS, jnp.float32).at[:, :K].set(bsa)
    cent_p = jnp.zeros((Kp, D), jnp.float32).at[:K].set(cent)

    desc_est = (2 * (P * Cin * bf16 + Cin * D * bf16 + D * f32 + D * Kp * bf16
                     + Kp * f32 + Kp * D * f32 + K * D * bf16)
                + 4 * P * D * f32 + 4 * P * Kp * f32 + 4 * Kp * D * f32)

    full = lambda shape: pl.BlockSpec(shape, lambda n: tuple(0 for _ in shape))

    desc = pl.pallas_call(
        descriptor_kernel,
        out_shape=jax.ShapeDtypeStruct((N, K, D), jnp.bfloat16),
        grid=(N,),
        in_specs=[
            pl.BlockSpec((1, P, Cin), lambda n: (n, 0, 0)),   # one image
            full((Cin, D)),                                   # base conv W (bf16)
            full((1, D)),                                     # base conv bias
            full((D, Kp)),                                    # soft-assign W (bf16)
            full((1, Kp)),                                    # soft-assign bias
            full((Kp, D)),                                    # centroids (f32)
        ],
        out_specs=pl.BlockSpec((1, K, D), lambda n: (n, 0, 0)),
        compiler_params=pltpu.CompilerParams(
            dimension_semantics=("parallel",),
            vmem_limit_bytes=_clamp_vmem_limit(desc_est, vmem_cap)),
    )(x_pc, wb_bf, bb, wsa_p, bsa_p, cent_p)

    # Free row-major view in HBM: (N, K, D) -> (N, K*D), matching torch .view(N, -1).
    desc_flat = desc.reshape(N, KD)

    # ---- stage 2: batched PCA GEMM -------------------------------------------
    tn = _pick_out_tile(KD, OUT, vmem_cap)
    num_out_tiles = OUT // tn

    wp_bf = wp.astype(jnp.bfloat16)
    # Pre-tile so each streamed wp block is one contiguous (KD*tn*2)-byte DMA.
    wp_tiled = jnp.transpose(wp_bf.reshape(KD, num_out_tiles, tn), (1, 0, 2))

    pca_est = (2 * (N * KD * bf16 + KD * tn * bf16 + tn * f32 + N * tn * f32)
               + 2 * N * tn * f32)

    y = pl.pallas_call(
        pca_kernel,
        out_shape=jax.ShapeDtypeStruct((N, OUT), jnp.float32),
        grid=(num_out_tiles,),
        in_specs=[
            pl.BlockSpec((N, KD), lambda j: (0, 0)),          # whole-batch descriptors
            pl.BlockSpec((1, KD, tn), lambda j: (j, 0, 0)),   # contiguous wp tile
            pl.BlockSpec((1, tn), lambda j: (0, j)),          # bias tile
        ],
        out_specs=pl.BlockSpec((N, tn), lambda j: (0, j)),
        compiler_params=pltpu.CompilerParams(
            # parallel OUT-tile axis: on v7x each core streams a disjoint half of wp
            dimension_semantics=("parallel",),
            vmem_limit_bytes=_clamp_vmem_limit(pca_est, vmem_cap)),
    )(desc_flat, wp_tiled, bp)

    # Final L2 norm spans OUT tiles -> tiny XLA epilogue.
    return y * lax.rsqrt(
        jnp.maximum(jnp.sum(y * y, axis=-1, keepdims=True), EPS * EPS))


# --------------------------------------------------------------------------
# Pure-JAX f32 reference mirroring the PyTorch semantics
# --------------------------------------------------------------------------
def reference_forward(x_nchw, params):
    wb, bb, wsa, bsa, cent, wp, bp = params
    N, Cin, H, W = x_nchw.shape
    xp = jnp.transpose(x_nchw.reshape(N, Cin, H * W), (0, 2, 1))     # (N, P, Cin)
    feat = jnp.maximum(xp @ wb + bb, 0.0)                            # (N, P, D)
    featn = feat / jnp.maximum(
        jnp.linalg.norm(feat, axis=-1, keepdims=True), EPS)
    a = jax.nn.softmax(featn @ wsa + bsa, axis=-1)                   # (N, P, K)
    vlad = jnp.einsum('npk,npd->nkd', a, featn) \
        - cent[None] * jnp.sum(a, axis=1)[..., None]                 # (N, K, D)
    vlad = vlad / jnp.maximum(
        jnp.linalg.norm(vlad, axis=-1, keepdims=True), EPS)
    v = vlad.reshape(N, -1)
    v = v / jnp.maximum(jnp.linalg.norm(v, axis=-1, keepdims=True), EPS)
    y = v @ wp + bp
    y = y / jnp.maximum(jnp.linalg.norm(y, axis=-1, keepdims=True), EPS)
    return y


if __name__ == "__main__":
    # Small shapes consistent with the module:
    N, Cin, H, W = 2, 4, 16, 16       # input image-like tensor (NCHW)
    D = 32                            # net_vlad.dim (base feature channels)
    K = 8                             # net_vlad.num_clusters
    OUT = 128                         # pca output dim (module default 4096, shrunk)

    key = jax.random.PRNGKey(0)
    ks = jax.random.split(key, 8)
    x = jax.random.normal(ks[0], (N, Cin, H, W), jnp.float32)

    params = (
        jax.random.normal(ks[1], (Cin, D), jnp.float32) * 0.2,      # base 1x1 conv W
        jax.random.normal(ks[2], (1, D), jnp.float32) * 0.05,       # base conv bias
        jax.random.normal(ks[3], (D, K), jnp.float32) * 0.2,        # soft-assign W
        jax.random.normal(ks[4], (1, K), jnp.float32) * 0.05,       # soft-assign bias
        jax.random.normal(ks[5], (K, D), jnp.float32) * 0.5,        # centroids
        jax.random.normal(ks[6], (K * D, OUT), jnp.float32) * 0.1,  # pca W
        jax.random.normal(ks[7], (1, OUT), jnp.float32) * 0.05,     # pca bias
    )

    out = jax.block_until_ready(embednet_pca_forward(x, params))
    ref = reference_forward(x, params)

    assert out.shape == (N, OUT)
    max_err = jnp.max(jnp.abs(out - ref))
    # bf16 MXU operands (f32 accumulation / softmax / norms) -> bf16-level
    # agreement with the pure-f32 reference.
    assert jnp.allclose(out, ref, atol=2e-2, rtol=2e-2), \
        f"max abs err {max_err}"

    print("KERNEL_OK")
</pallas_src>

<mosaic_0001>
module attributes {stable_mosaic.version = 11 : i64} {
  func.func @descriptor_kernel(%arg0: i32, %arg1: memref<1x256x4xbf16, #tpu.memory_space<vmem>>, %arg2: memref<4x32xbf16, #tpu.memory_space<vmem>>, %arg3: memref<1x32xf32, #tpu.memory_space<vmem>>, %arg4: memref<32x128xbf16, #tpu.memory_space<vmem>>, %arg5: memref<1x128xf32, #tpu.memory_space<vmem>>, %arg6: memref<128x32xf32, #tpu.memory_space<vmem>>, %arg7: memref<1x8x32xbf16, #tpu.memory_space<vmem>>) attributes {dimension_semantics = [#tpu.dimension_semantics<parallel>], iteration_bounds = array<i64: 2>, scalar_prefetch = 0 : i64, scratch_operands = 0 : i64, tpu.core_type = #tpu.core_type<tc>, window_params = [{transform_indices = @transform_0, window_bounds = array<i64: 1, 256, 4>}, {pipeline_mode = #tpu.pipeline_mode<synchronous>, transform_indices = @transform_1, window_bounds = array<i64: 4, 32>}, {pipeline_mode = #tpu.pipeline_mode<synchronous>, transform_indices = @transform_2, window_bounds = array<i64: 1, 32>}, {pipeline_mode = #tpu.pipeline_mode<synchronous>, transform_indices = @transform_3, window_bounds = array<i64: 32, 128>}, {pipeline_mode = #tpu.pipeline_mode<synchronous>, transform_indices = @transform_4, window_bounds = array<i64: 1, 128>}, {pipeline_mode = #tpu.pipeline_mode<synchronous>, transform_indices = @transform_5, window_bounds = array<i64: 128, 32>}, {transform_indices = @transform_6, window_bounds = array<i64: 1, 8, 32>}]} {
    %c0 = arith.constant 0 : index
    %c0_0 = arith.constant 0 : index
    %c0_1 = arith.constant 0 : index
    %0 = vector.load %arg1[%c0, %c0_0, %c0_1] : memref<1x256x4xbf16, #tpu.memory_space<vmem>>, vector<1x256x4xbf16>
    %1 = vector.shape_cast %0 : vector<1x256x4xbf16> to vector<256x4xbf16>
    %c0_2 = arith.constant 0 : index
    %c0_3 = arith.constant 0 : index
    %2 = vector.load %arg2[%c0_2, %c0_3] : memref<4x32xbf16, #tpu.memory_space<vmem>>, vector<4x32xbf16>
    %cst = arith.constant dense<0.000000e+00> : vector<256x32xf32>
    %3 = tpu.matmul %1, %2, %cst {dimension_numbers = #tpu.dot_dimension_numbers<[1], [0], [0], [1], [0, 0, 1, 1], [], []>} : vector<256x4xbf16>, vector<4x32xbf16>, vector<256x32xf32> -> vector<256x32xf32>
    %c0_4 = arith.constant 0 : index
    %c0_5 = arith.constant 0 : index
    %4 = vector.load %arg3[%c0_4, %c0_5] : memref<1x32xf32, #tpu.memory_space<vmem>>, vector<1x32xf32>
    %5 = vector.broadcast %4 : vector<1x32xf32> to vector<256x32xf32>
    %6 = arith.addf %3, %5 : vector<256x32xf32>
    %cst_6 = arith.constant 0.000000e+00 : f32
    %7 = vector.broadcast %cst_6 : f32 to vector<256x32xf32>
    %8 = arith.maximumf %6, %7 : vector<256x32xf32>
    %9 = arith.mulf %8, %8 : vector<256x32xf32>
    %cst_7 = arith.constant dense<0.000000e+00> : vector<256xf32>
    %10 = vector.multi_reduction <add>, %9, %cst_7 [1] : vector<256x32xf32> to vector<256xf32>
    %11 = vector.shape_cast %10 : vector<256xf32> to vector<256x1xf32>
    %cst_8 = arith.constant 1.000000e-24 : f32
    %12 = vector.broadcast %cst_8 : f32 to vector<256x1xf32>
    %13 = arith.maximumf %11, %12 : vector<256x1xf32>
    %14 = math.rsqrt %13 : vector<256x1xf32>
    %15 = vector.broadcast %14 : vector<256x1xf32> to vector<256x32xf32>
    %16 = arith.mulf %8, %15 : vector<256x32xf32>
    %17 = arith.truncf %16 : vector<256x32xf32> to vector<256x32xbf16>
    %c0_9 = arith.constant 0 : index
    %c0_10 = arith.constant 0 : index
    %18 = vector.load %arg4[%c0_9, %c0_10] : memref<32x128xbf16, #tpu.memory_space<vmem>>, vector<32x128xbf16>
    %cst_11 = arith.constant dense<0.000000e+00> : vector<256x128xf32>
    %19 = tpu.matmul %17, %18, %cst_11 {dimension_numbers = #tpu.dot_dimension_numbers<[1], [0], [0], [1], [0, 0, 1, 1], [], []>} : vector<256x32xbf16>, vector<32x128xbf16>, vector<256x128xf32> -> vector<256x128xf32>
    %c0_12 = arith.constant 0 : index
    %c0_13 = arith.constant 0 : index
    %20 = vector.load %arg5[%c0_12, %c0_13] : memref<1x128xf32, #tpu.memory_space<vmem>>, vector<1x128xf32>
    %21 = vector.broadcast %20 : vector<1x128xf32> to vector<256x128xf32>
    %22 = arith.addf %19, %21 : vector<256x128xf32>
    %cst_14 = arith.constant dense<0xFF800000> : vector<256xf32>
    %23 = vector.multi_reduction <maximumf>, %22, %cst_14 [1] : vector<256x128xf32> to vector<256xf32>
    %24 = vector.shape_cast %23 : vector<256xf32> to vector<256x1xf32>
    %25 = vector.broadcast %24 : vector<256x1xf32> to vector<256x128xf32>
    %26 = arith.subf %22, %25 : vector<256x128xf32>
    %27 = math.exp %26 : vector<256x128xf32>
    %cst_15 = arith.constant dense<0.000000e+00> : vector<256xf32>
    %28 = vector.multi_reduction <add>, %27, %cst_15 [1] : vector<256x128xf32> to vector<256xf32>
    %29 = vector.shape_cast %28 : vector<256xf32> to vector<256x1xf32>
    %30 = vector.broadcast %29 : vector<256x1xf32> to vector<256x128xf32>
    %31 = arith.divf %27, %30 : vector<256x128xf32>
    %32 = arith.truncf %31 : vector<256x128xf32> to vector<256x128xbf16>
    %cst_16 = arith.constant dense<0.000000e+00> : vector<128x32xf32>
    %33 = tpu.matmul %32, %17, %cst_16 {dimension_numbers = #tpu.dot_dimension_numbers<[0], [0], [1], [1], [0, 1, 1, 1], [], []>} : vector<256x128xbf16>, vector<256x32xbf16>, vector<128x32xf32> -> vector<128x32xf32>
    %cst_17 = arith.constant dense<0.000000e+00> : vector<128xf32>
    %34 = vector.multi_reduction <add>, %31, %cst_17 [0] : vector<256x128xf32> to vector<128xf32>
    %35 = vector.shape_cast %34 : vector<128xf32> to vector<1x128xf32>
    %36 = tpu.iota {dimensions = array<i32: 0>} : vector<128x128xi32>
    %37 = tpu.iota {dimensions = array<i32: 1>} : vector<128x128xi32>
    %38 = arith.cmpi eq, %36, %37 : vector<128x128xi32>
    %cst_18 = arith.constant 0.000000e+00 : f32
    %39 = vector.shape_cast %35 : vector<1x128xf32> to vector<1x128xf32>
    %40 = vector.broadcast %39 : vector<1x128xf32> to vector<128x128xf32>
    %41 = vector.broadcast %cst_18 : f32 to vector<128x128xf32>
    %42 = arith.select %38, %40, %41 : vector<128x128xi1>, vector<128x128xf32>
    %cst_19 = arith.constant dense<0.000000e+00> : vector<128xf32>
    %43 = vector.multi_reduction <add>, %42, %cst_19 [1] : vector<128x128xf32> to vector<128xf32>
    %44 = vector.shape_cast %43 : vector<128xf32> to vector<128x1xf32>
    %c0_20 = arith.constant 0 : index
    %c0_21 = arith.constant 0 : index
    %45 = vector.load %arg6[%c0_20, %c0_21] : memref<128x32xf32, #tpu.memory_space<vmem>>, vector<128x32xf32>
    %46 = vector.broadcast %44 : vector<128x1xf32> to vector<128x32xf32>
    %47 = arith.mulf %45, %46 : vector<128x32xf32>
    %48 = arith.subf %33, %47 : vector<128x32xf32>
    %49 = arith.mulf %48, %48 : vector<128x32xf32>
    %cst_22 = arith.constant dense<0.000000e+00> : vector<128xf32>
    %50 = vector.multi_reduction <add>, %49, %cst_22 [1] : vector<128x32xf32> to vector<128xf32>
    %51 = vector.shape_cast %50 : vector<128xf32> to vector<128x1xf32>
    %cst_23 = arith.constant 1.000000e-24 : f32
    %52 = vector.broadcast %cst_23 : f32 to vector<128x1xf32>
    %53 = arith.maximumf %51, %52 : vector<128x1xf32>
    %54 = math.rsqrt %53 : vector<128x1xf32>
    %55 = vector.broadcast %54 : vector<128x1xf32> to vector<128x32xf32>
    %56 = arith.mulf %48, %55 : vector<128x32xf32>
    %57 = arith.mulf %56, %56 : vector<128x32xf32>
    %cst_24 = arith.constant dense<0.000000e+00> : vector<128xf32>
    %58 = vector.multi_reduction <add>, %57, %cst_24 [1] : vector<128x32xf32> to vector<128xf32>
    %59 = vector.shape_cast %58 : vector<128xf32> to vector<128x1xf32>
    %cst_25 = arith.constant dense<0.000000e+00> : vector<1xf32>
    %60 = vector.multi_reduction <add>, %59, %cst_25 [0] : vector<128x1xf32> to vector<1xf32>
    %61 = vector.shape_cast %60 : vector<1xf32> to vector<1x1xf32>
    %cst_26 = arith.constant 1.000000e-24 : f32
    %62 = vector.broadcast %cst_26 : f32 to vector<1x1xf32>
    %63 = arith.maximumf %61, %62 : vector<1x1xf32>
    %64 = math.rsqrt %63 : vector<1x1xf32>
    %65 = vector.extract_strided_slice %56 {offsets = [0, 0], sizes = [8, 32], strides = [1, 1]} : vector<128x32xf32> to vector<8x32xf32>
    %66 = vector.broadcast %64 : vector<1x1xf32> to vector<8x32xf32>
    %67 = arith.mulf %65, %66 : vector<8x32xf32>
    %68 = arith.truncf %67 : vector<8x32xf32> to vector<8x32xbf16>
    %c0_27 = arith.constant 0 : index
    %c0_28 = arith.constant 0 : index
    %c0_29 = arith.constant 0 : index
    %69 = vector.load %arg7[%c0_27, %c0_28, %c0_29] : memref<1x8x32xbf16, #tpu.memory_space<vmem>>, vector<1x8x32xbf16>
    %70 = vector.shape_cast %69 : vector<1x8x32xbf16> to vector<8x32xbf16>
    %71 = vector.shape_cast %68 : vector<8x32xbf16> to vector<1x8x32xbf16>
    tpu.vector_store %arg7[%c0_27, %c0_28, %c0_29], %71 {strides = array<i32>} : memref<1x8x32xbf16, #tpu.memory_space<vmem>>, vector<1x8x32xbf16>,
    return
  }
  func.func @transform_0(%arg0: i32) -> (i32, i32, i32) {
    %c0_i32 = arith.constant 0 : i32
    %c0_i32_0 = arith.constant 0 : i32
    %c0_i32_1 = arith.constant 0 : i32
    return %arg0, %c0_i32, %c0_i32_0 : i32, i32, i32
  }
  func.func @transform_1(%arg0: i32) -> (i32, i32) {
    %c0_i32 = arith.constant 0 : i32
    %c0_i32_0 = arith.constant 0 : i32
    %c0_i32_1 = arith.constant 0 : i32
    return %c0_i32, %c0_i32_0 : i32, i32
  }
  func.func @transform_2(%arg0: i32) -> (i32, i32) {
    %c0_i32 = arith.constant 0 : i32
    %c0_i32_0 = arith.constant 0 : i32
    %c0_i32_1 = arith.constant 0 : i32
    return %c0_i32, %c0_i32_0 : i32, i32
  }
  func.func @transform_3(%arg0: i32) -> (i32, i32) {
    %c0_i32 = arith.constant 0 : i32
    %c0_i32_0 = arith.constant 0 : i32
    %c0_i32_1 = arith.constant 0 : i32
    return %c0_i32, %c0_i32_0 : i32, i32
  }
  func.func @transform_4(%arg0: i32) -> (i32, i32) {
    %c0_i32 = arith.constant 0 : i32
    %c0_i32_0 = arith.constant 0 : i32
    %c0_i32_1 = arith.constant 0 : i32
    return %c0_i32, %c0_i32_0 : i32, i32
  }
  func.func @transform_5(%arg0: i32) -> (i32, i32) {
    %c0_i32 = arith.constant 0 : i32
    %c0_i32_0 = arith.constant 0 : i32
    %c0_i32_1 = arith.constant 0 : i32
    return %c0_i32, %c0_i32_0 : i32, i32
  }
  func.func @transform_6(%arg0: i32) -> (i32, i32, i32) {
    %c0_i32 = arith.constant 0 : i32
    %c0_i32_0 = arith.constant 0 : i32
    %c0_i32_1 = arith.constant 0 : i32
    return %arg0, %c0_i32, %c0_i32_0 : i32, i32, i32
  }
}

</mosaic_0001>

<bundles_post_ra>
// kernel: tpu_custom_call.1
= control target key start
LH: loop header
LB: loop body
LE: loop exit
PB: predicated region body
PF: predicated region fallthrough
CT: control target
= control target key end

     0   :  { %11 = vsyncpa [#allocation3], 0  ;;  %s3542_s0 = inlined_call_operand.vmem [shape: bf16[2,256,4], index: 0, kind: input, shape index: {}]   ;;  %s3543_s1 = inlined_call_operand.vmem [shape: bf16[4,32], index: 1, kind: input, shape index: {}]   ;;  %s3544_s2 = inlined_call_operand.vmem [shape: f32[1,32], index: 2, kind: input, shape index: {}]   ;;  %s3545_s3 = inlined_call_operand.vmem [shape: bf16[32,128], index: 3, kind: input, shape index: {}]   ;;  %s3546_s4 = inlined_call_operand.vmem [shape: f32[1,128], index: 4, kind: input, shape index: {}]   ;;  %s3547_s5 = inlined_call_operand.vmem [shape: f32[128,32], index: 5, kind: input, shape index: {}]   ;;  %s3548_s6 = inlined_call_operand.hbm [shape: bf16[2,8,32], index: 6, kind: output, shape index: {}]  }
   0x1   :  { %13 = vsyncpa [#allocation3 + $0x1], 0  ;;  %s2587_s21 = smov 0   ;;  %s2589_s22 = smov 0  }
   0x2   :  { %s2591_s23 = smov 0   ;;  %s2593_s24 = smov 0  }
   0x3 LB: > { %s2608_s25 = sadd.s32 4294967295, %s2549_s24   ;;  %s1967_s26 = sadd.s32 4294967294, %s2549_s24   ;;  %s2549_s24 = sphi %s2593_s24, %s3554_s24   ;;  %s2545_s23 = sphi %s2591_s23, %s3553_s23   ;;  %s2541_s22 = sphi %s2589_s22, %s3552_s22   ;;  %s2537_s21 = sphi %s2587_s21, %s3551_s21  }
   0x4   : > { %s2612_s27 = sadd.s32 1, %s2549_s24   ;;  %s157_s28 = sadd.s32 1, %s2545_s23 }
   0x5   : > { %s154_s29 = ssub.s32 %s2549_s24, %s2612_s27  ;;  %p167_p0 = scmp.ne.s32.totalorder %s2545_s23, %s2541_s22 }
   0x6   : > { %p155_p1 = scmp.eq.s32.totalorder %s154_s29, 0  ;;  %p168_p2 = scmp.eq.s32.totalorder %s2608_s25, 1 }
   0x7   : > { %p173_p3 = scmp.ne.s32.totalorder %s2541_s22, %s2537_s21  ;;  %p174_p4 = scmp.eq.s32.totalorder %s1967_s26, 1 }
   0x8   : > { %s2623_s30 = scalar_select %p155_p1, %s2545_s23, %s157_s28  }
   0x9   : > { %p2625_p5 = por %p168_p2, %p167_p0  ;;  %p2629_p6 = por %p174_p4, %p173_p3 }
   0xa   : > { %p1970_p7 = scmp.ge.s32.totalorder %s2549_s24, 1  ;;  %p215_p8 = scmp.lt.s32.totalorder %s2549_s24, 3 }
   0xc   : > { %p216_p9 = pnand %p1970_p7, %p215_p8 }
   0xd   : > { %v283_v0 = vld [vmem:[%s3543_s1] sm:$0x3] (!%p216_p9)  ;;  %vm420_vm0 = vcmask (!%p216_p9), 1041408   ;;  %p245_p10 = scmp.lt.s32.totalorder (!%p216_p9), %s2608_s25, 1  ;;  %vm371_vm1 = vcmask (!%p216_p9), 31744   ;;  %vm649_vm2 = vcmask (!%p216_p9), 261120  }
   0xe   : > { %219 = sbr.rel (%p216_p9) target bundleno = 1707 (0x6ab), region = 44  ;;  %2202 = vmatprep.subr.msk.bf16.mxu0 (!%p216_p9), %vm420_vm0, %v283_v0  ;;  %v422_v1 = vsel (!%p216_p9), %vm420_vm0, %v283_v0, 0  ;;  %2203 = vmatprep.subr.msk.bf16.mxu1 (!%p216_p9), %vm420_vm0, %v283_v0  ;;  %v2259_v18 = vld [vmem:[%s3545_s3] sm:$0xff] (!%p216_p9)   ;;  %s2027_s13 = sshll.u32 (!%p216_p9), %s2608_s25, 6 }
   0xf   : > { %2131 = vmatpush3.bf16.msra.mxu0 (!%p216_p9), %v422_v1  ;;  %2201 = vmatpush3.bf16.msra.mxu1 (!%p216_p9), %v422_v1  ;;  %v2683_v19 = vld [vmem:[%s3544_s2] ss:$0 sm:$0xff] (!%p216_p9)  ;;  %s3500_s18 = scalar_lea.hbm (!%p216_p9), %s3548_s6, %s2027_s13 }
  0x10   : > { %2164 = vmatprep.subr.bf16.mxu1 (!%p216_p9), %v2259_v18 }
  0x15   : > { %s246_s11 = scalar_select %p245_p10, %s2608_s25, 1 }
  0x16   : > { %s2551_s25 = smov [#allocation2]  }
  0x17   : > { %s2030_s12 = sshll.u32 %s246_s11, 7  ;;  %s242_s11 = sand.u32 1, %s2541_s22  }
  0x18   : > { %s2643_s15 = scalar_lea.vmem %s3542_s0, %s2030_s12  ;;  %s1971_s12 = sshll.u32 %s242_s11, 2 }
  0x19   : > { %v2243_v2 = vld [vmem:[%s2643_s15] sm:$0xff]   ;;  %v2244_v3 = vld [vmem:[%s2643_s15 + $0x8] sm:$0xff]   ;;  %v2245_v4 = vld [vmem:[%s2643_s15 + $0x10] sm:$0xff]   ;;  %s244_s14 = scalar_lea.vmem [#allocation2], %s1971_s12  ;;  %s1895_s19 = scalar_lea.sflag [#allocation3], %s242_s11 }
  0x1a   : > { %2132 = vmatprep.mubr.msk.bf16.mxu0 %vm371_vm1, %v2243_v2  ;;  %v2246_v5 = vld [vmem:[%s2643_s15 + $0x18] sm:$0xff]   ;;  %v2247_v6 = vld [vmem:[%s2643_s15 + $0x20] sm:$0xff]   ;;  %v2252_v8 = vld [vmem:[%s2643_s15 + $0x48] sm:$0xff]   ;;  %s2491_s26 = sshll.u32 %s2551_s25, 4  ;;  %s2492_s26 = int_to_ptr.vmem [resolvable:$false] %s2491_s26 }
  0x1b   : > { %2133 = vmatmul.mubr.msk.bf16.vlgmr.msra.gmra.mrb[0].mxu0 %vm371_vm1, %v2244_v3  ;;  %v2251_v7 = vld [vmem:[%s2643_s15 + $0x40] sm:$0xff]   ;;  %v2253_v9 = vld [vmem:[%s2643_s15 + $0x50] sm:$0xff]   ;;  %v2248_v10 = vld [vmem:[%s2643_s15 + $0x28] sm:$0xff]   ;;  %s2493_s28 = scalar_lea.vmem %s2492_s26, 128 }
  0x1c   : > { %2136 = vmatprep.mubr.msk.bf16.mxu0 %vm371_vm1, %v2245_v4  ;;  %2148 = vmatprep.mubr.msk.bf16.mxu1 %vm371_vm1, %v2251_v7  ;;  %v2254_v11 = vld [vmem:[%s2643_s15 + $0x58] sm:$0xff]   ;;  %v2249_v12 = vld [vmem:[%s2643_s15 + $0x30] sm:$0xff]   ;;  %v2255_v13 = vld [vmem:[%s2643_s15 + $0x60] sm:$0xff]  }
  0x1d   : > { %2149 = vmatmul.mubr.msk.bf16.vlgmr.msra.gmra.mrb[0].mxu1 %vm371_vm1, %v2252_v8  ;;  %v2250_v14 = vld [vmem:[%s2643_s15 + $0x38] sm:$0xff]   ;;  %v2256_v15 = vld [vmem:[%s2643_s15 + $0x68] sm:$0xff]   ;;  %v2257_v16 = vld [vmem:[%s2643_s15 + $0x70] sm:$0xff]  }
  0x1e   : > { %2152 = vmatprep.mubr.msk.bf16.mxu1 %vm371_vm1, %v2253_v9  ;;  %v2258_v17 = vld [vmem:[%s2643_s15 + $0x78] sm:$0xff]   ;;  %2165 = vmatpush3.bf16.msra.mxu1 %v2259_v18  ;;  %s1908_s15 = sshll.u32 %s244_s14, 4  ;;  %s3502_s15 = int_to_ptr.vmem [resolvable:$true] %s1908_s15 }
  0x1f   : > { %s2487_s20 = scalar_lea.vmem %s3502_s15, 64  ;;  %p2494_p0 = scmp.lt.s32.totalorder %s3502_s15, %s2492_s26 }
  0x20   : > { %p2488_p11 = scmp.ne.s32.totalorder %s3502_s15, %s2487_s20  ;;  %p2495_p1 = scmp.lt.s32.totalorder %s2493_s28, %s2487_s20 }
  0x22   : > { %p2489_p12 = pnand %p2488_p11, %p2625_p5  ;;  %p2496_p2 = por %p2495_p1, %p2494_p0 }
  0x23   : > { %2137 = vmatmul.mubr.msk.bf16.gmra.mrb[4].mxu0 %vm371_vm1, %v2246_v5 }
  0x24   : > { %2140 = vmatprep.mubr.msk.bf16.mxu0 %vm371_vm1, %v2247_v6  ;;  %p2490_p13 = pneg %p2489_p12 }
  0x25   : > { %2153 = vmatmul.mubr.msk.bf16.gmra.mrb[4].mxu1 %vm371_vm1, %v2254_v11 }
  0x26   : > { %2156 = vmatprep.mubr.msk.bf16.mxu1 %vm371_vm1, %v2255_v13  ;;  %p2497_p3 = pnand %p2496_p2, %p2490_p13 }
  0x2b   : > { %2141 = vmatmul.mubr.msk.bf16.gmra.mrb[8].mxu0 %vm371_vm1, %v2248_v10 }
  0x2c   : > { %2144 = vmatprep.mubr.msk.bf16.mxu0 %vm371_vm1, %v2249_v12 }
  0x2d   : > { %2157 = vmatmul.mubr.msk.bf16.gmra.mrb[8].mxu1 %vm371_vm1, %v2256_v15 }
  0x2e   : > { %2160 = vmatprep.mubr.msk.bf16.mxu1 %vm371_vm1, %v2257_v16 }
  0x33   : > { %2145 = vmatmul.mubr.msk.bf16.gmra.mrb[12].mxu0 %vm371_vm1, %v2250_v14 }
  0x35   : > { %2161 = vmatmul.mubr.msk.bf16.gmra.mrb[12].mxu1 %vm371_vm1, %v2258_v17 }
  0xee   : > { %v2134_v20 = vpop.f32.mrb[0].mxu0 }
  0xef   : > { %v467_v21 = vadd.f32 %v2134_v20, %v2683_v19  ;;  %v458_v22 = vpop.f32.mrb[1].mxu0 }
  0xf0   : > { %v459_v23 = vadd.f32 %v2683_v19, %v458_v22  ;;  %v2135_v24 = vpop.f32.mrb[2].mxu0  ;;  %v2707_v39 = vpop.f32.mrb[0].mxu1 }
  0xf1   : > { %v2687_v25 = vmax.f32 %v467_v21, 0.0  ;;  %v470_v26 = vadd.f32 %v2135_v24, %v2683_v19  ;;  %v461_v27 = vpop.f32.mrb[3].mxu0  ;;  %v522_v42 = vpop.f32.mrb[1].mxu1 }
  0xf2   : > { %v2690_v28 = vmax.f32 %v459_v23, 0.0  ;;  %v462_v29 = vadd.f32 %v2683_v19, %v461_v27  ;;  %v2711_v45 = vpop.f32.mrb[2].mxu1 }
  0xf3   : > { %v2693_v30 = vmax.f32 %v470_v26, 0.0  ;;  %v619_v31 = vmul.f32 %v2687_v25, %v2687_v25  ;;  %v2715_v49 = vpop.f32.mrb[3].mxu1  ;;  %v523_v26 = vadd.f32 %v2683_v19, %v522_v42 }
  0xf4   : > { %v2697_v32 = vmax.f32 %v462_v29, 0.0  ;;  %v617_v33 = vmul.f32 %v2690_v28, %v2690_v28 }
  0xf5   : > { %v656_v34 = vsel %vm649_vm2, %v619_v31, 0.0  ;;  %v620_v35 = vmul.f32 %v2693_v30, %v2693_v30 }
  0xf6   : > { %657 = vadd.xlane.f32.xlu1 %v656_v34  ;;  %v2138_v36 = vpop.f32.mrb[4].mxu0  ;;  %v650_v37 = vsel %vm649_vm2, %v617_v33, 0.0  ;;  %v618_v38 = vmul.f32 %v2697_v32, %v2697_v32 }
  0xf7   : > { %v483_v40 = vadd.f32 %v2138_v36, %v2683_v19  ;;  %v474_v41 = vpop.f32.mrb[5].mxu0  ;;  %651 = vadd.xlane.f32.xlu0 %v650_v37  ;;  %v659_v48 = vsel %vm649_vm2, %v620_v35, 0.0 }
  0xf8   : > { %v475_v43 = vadd.f32 %v2683_v19, %v474_v41  ;;  %v2139_v44 = vpop.f32.mrb[6].mxu0  ;;  %v653_v53 = vsel %vm649_vm2, %v618_v38, 0.0  ;;  %v2734_v61 = vpop.f32.mrb[4].mxu1 }
  0xf9   : > { %v486_v46 = vadd.f32 %v2139_v44, %v2683_v19  ;;  %v477_v47 = vpop.f32.mrb[7].mxu0  ;;  %v2717_v50 = vmax.f32 %v483_v40, 0.0  ;;  %v538_v0 = vpop.f32.mrb[5].mxu1  ;;  %v2781_v44 = vmax.f32 %v523_v26, 0.0 }
  0xfa   : > { %v2719_v51 = vmax.f32 %v475_v43, 0.0  ;;  %v478_v52 = vadd.f32 %v2683_v19, %v477_v47  ;;  %660 = vadd.xlane.f32.xlu1 %v659_v48  ;;  %v2741_v5 = vpop.f32.mrb[6].mxu1 }
  0xfb   : > { %654 = vadd.xlane.f32.xlu0 %v653_v53  ;;  %v2723_v54 = vmax.f32 %v486_v46, 0.0  ;;  %v623_v60 = vmul.f32 %v2717_v50, %v2717_v50  ;;  %v2744_v8 = vpop.f32.mrb[7].mxu1  ;;  %v526_v46 = vadd.f32 %v2683_v19, %v2715_v49 }
  0xfc   : > { %v2725_v55 = vmax.f32 %v478_v52, 0.0  ;;  %v621_v56 = vmul.f32 %v2719_v51, %v2719_v51 }
  0xfd   : > { %v624_v4 = vmul.f32 %v2723_v54, %v2723_v54  ;;  %v668_v12 = vsel %vm649_vm2, %v623_v60, 0.0  ;;  %v534_v60 = vadd.f32 %v2711_v45, %v2683_v19 }
  0xfe   : > { %v2142_v57 = vpop.f32.mrb[8].mxu0  ;;  %v662_v58 = vsel %vm649_vm2, %v621_v56, 0.0  ;;  %v622_v59 = vmul.f32 %v2725_v55, %v2725_v55  ;;  %v531_v56 = vadd.f32 %v2707_v39, %v2683_v19 }
  0xff   : > { %v499_v62 = vadd.f32 %v2142_v57, %v2683_v19  ;;  %v490_v63 = vpop.f32.mrb[9].mxu0  ;;  %663 = vadd.xlane.f32.xlu0 %v662_v58  ;;  %v671_v15 = vsel %vm649_vm2, %v624_v4, 0.0 }
 0x100   : > { %v491_v1 = vadd.f32 %v2683_v19, %v490_v63  ;;  %v2143_v2 = vpop.f32.mrb[10].mxu0  ;;  %v665_v3 = vsel %vm649_vm2, %v622_v59, 0.0  ;;  %v2764_v22 = vpop.f32.mrb[8].mxu1 }
 0x101   : > { %v502_v6 = vadd.f32 %v2143_v2, %v2683_v19  ;;  %v493_v7 = vpop.f32.mrb[11].mxu0  ;;  %666 = vadd.xlane.f32.xlu1 %v665_v3  ;;  %v2746_v9 = vmax.f32 %v499_v62, 0.0  ;;  %v554_v27 = vpop.f32.mrb[9].mxu1  ;;  %v633_v62 = vmul.f32 %v2781_v44, %v2781_v44  ;;  %v539_v2 = vadd.f32 %v2683_v19, %v538_v0 }
 0x102   : > { %v2748_v10 = vmax.f32 %v491_v1, 0.0  ;;  %v494_v11 = vadd.f32 %v2683_v19, %v493_v7  ;;  %v2772_v35 = vpop.f32.mrb[10].mxu1  ;;  %v2805_v1 = vmax.f32 %v526_v46, 0.0  ;;  %v2811_v7 = vmax.f32 %v531_v56, 0.0 }
 0x103   : > { %669 = vadd.xlane.f32.xlu0 %v668_v12  ;;  %v2752_v13 = vmax.f32 %v502_v6, 0.0  ;;  %v627_v21 = vmul.f32 %v2746_v9, %v2746_v9  ;;  %v557_v38 = vpop.f32.mrb[11].mxu1  ;;  %v698_v12 = vsel %vm649_vm2, %v633_v62, 0.0  ;;  %v542_v0 = vadd.f32 %v2683_v19, %v2744_v8 }
 0x104   : > { %v2754_v14 = vmax.f32 %v494_v11, 0.0  ;;  %v625_v16 = vmul.f32 %v2748_v10, %v2748_v10  ;;  %v2814_v11 = vmax.f32 %v534_v60, 0.0 }
 0x105   : > { %672 = vadd.xlane.f32.xlu1 %v671_v15  ;;  %v628_v34 = vmul.f32 %v2752_v13, %v2752_v13  ;;  %v680_v43 = vsel %vm649_vm2, %v627_v21, 0.0  ;;  %v2817_v15 = vmax.f32 %v539_v2, 0.0  ;;  %v635_v21 = vmul.f32 %v2811_v7, %v2811_v7 }
 0x106   : > { %v2146_v17 = vpop.f32.mrb[12].mxu0  ;;  %v674_v18 = vsel %vm649_vm2, %v625_v16, 0.0  ;;  %v626_v20 = vmul.f32 %v2754_v14, %v2754_v14  ;;  %v636_v8 = vmul.f32 %v2814_v11, %v2814_v11 }
 0x107   : > { %v515_v23 = vadd.f32 %v2146_v17, %v2683_v19  ;;  %v506_v24 = vpop.f32.mrb[13].mxu0  ;;  %675 = vadd.xlane.f32.xlu0 %v674_v18  ;;  %v683_v52 = vsel %vm649_vm2, %v628_v34, 0.0  ;;  %v634_v17 = vmul.f32 %v2805_v1, %v2805_v1  ;;  %v2260_v18 = vld [vmem:[%s3545_s3 + $0x8] sm:$0xff]  }
 0x108   : > { %v507_v29 = vadd.f32 %v2683_v19, %v506_v24  ;;  %v2147_v31 = vpop.f32.mrb[14].mxu0  ;;  %v677_v33 = vsel %vm649_vm2, %v626_v20, 0.0  ;;  %v2799_v59 = vpop.f32.mrb[12].mxu1  ;;  %v547_v20 = vadd.f32 %v2734_v61, %v2683_v19  ;;  %2166 = vmatprep.subr.bf16.mxu1 %v2260_v18  ;;  %v2835_v24 = vmax.f32 %v542_v0, 0.0 }
 0x109   : > { %v518_v36 = vadd.f32 %v2147_v31, %v2683_v19  ;;  %v509_v37 = vpop.f32.mrb[15].mxu0  ;;  %678 = vadd.xlane.f32.xlu1 %v677_v33  ;;  %v2775_v40 = vmax.f32 %v515_v23, 0.0  ;;  %v570_v63 = vpop.f32.mrb[13].mxu1  ;;  %v550_v23 = vadd.f32 %v2741_v5, %v2683_v19  ;;  %v701_v26 = vsel %vm649_vm2, %v634_v17, 0.0  ;;  %2167 = vmatpush3.bf16.msra.mxu1 %v2260_v18 }
 0x10a   : > { %v2777_v41 = vmax.f32 %v507_v29, 0.0  ;;  %v510_v42 = vadd.f32 %v2683_v19, %v509_v37  ;;  %v2163_v4 = vpop.f32.mrb[14].mxu1  ;;  %v555_v29 = vadd.f32 %v2683_v19, %v554_v27  ;;  %v637_v61 = vmul.f32 %v2817_v15, %v2817_v15 }
 0x10b   : > { %681 = vadd.xlane.f32.xlu0 %v680_v43  ;;  %v2785_v47 = vmax.f32 %v518_v36, 0.0  ;;  %v631_v49 = vmul.f32 %v2775_v40, %v2775_v40  ;;  %v573_v6 = vpop.f32.mrb[15].mxu1  ;;  %v2841_v31 = vmax.f32 %v547_v20, 0.0  ;;  %v704_v5 = vsel %vm649_vm2, %v635_v21, 0.0 }
 0x10c   : > { %v2787_v48 = vmax.f32 %v510_v42, 0.0  ;;  %v629_v53 = vmul.f32 %v2777_v41, %v2777_v41  ;;  %v2844_v33 = vmax.f32 %v550_v23, 0.0  ;;  %v707_v34 = vsel %vm649_vm2, %v636_v8, 0.0 }
 0x10d   : > { %684 = vadd.xlane.f32.xlu1 %v683_v52  ;;  %v632_v3 = vmul.f32 %v2785_v47, %v2785_v47  ;;  %v692_v45 = vsel %vm649_vm2, %v631_v49, 0.0  ;;  %v2847_v36 = vmax.f32 %v555_v29, 0.0  ;;  %v558_v37 = vadd.f32 %v2683_v19, %v557_v38 }
 0x10e   : > { %v686_v57 = vsel %vm649_vm2, %v629_v53, 0.0  ;;  %v630_v58 = vmul.f32 %v2787_v48, %v2787_v48  ;;  %v710_v27 = vsel %vm649_vm2, %v637_v61, 0.0  ;;  %v638_v42 = vmul.f32 %v2835_v24, %v2835_v24 }
 0x10f   : > { %687 = vadd.xlane.f32.xlu0 %v686_v57  ;;  %v695_v16 = vsel %vm649_vm2, %v632_v3, 0.0  ;;  %v563_v43 = vadd.f32 %v2764_v22, %v2683_v19  ;;  %v639_v46 = vmul.f32 %v2841_v31, %v2841_v31  ;;  %v566_v52 = vadd.f32 %v2772_v35, %v2683_v19 }
 0x110   : > { %v689_v39 = vsel %vm649_vm2, %v630_v58, 0.0  ;;  %v640_v53 = vmul.f32 %v2844_v33, %v2844_v33  ;;  %v2861_v38 = vmax.f32 %v558_v37, 0.0  ;;  %v713_v56 = vsel %vm649_vm2, %v638_v42, 0.0 }
 0x111   : > { %690 = vadd.xlane.f32.xlu1 %v689_v39  ;;  %v571_v57 = vadd.f32 %v2683_v19, %v570_v63  ;;  %v641_v58 = vmul.f32 %v2847_v36, %v2847_v36  ;;  %v2867_v22 = vmax.f32 %v563_v43, 0.0  ;;  %v716_v49 = vsel %vm649_vm2, %v639_v46, 0.0 }
 0x112   : > { %v2870_v60 = vmax.f32 %v566_v52, 0.0  ;;  %v719_v35 = vsel %vm649_vm2, %v640_v53, 0.0  ;;  %v574_v39 = vadd.f32 %v2683_v19, %v573_v6  ;;  %v642_v63 = vmul.f32 %v2861_v38, %v2861_v38 }
 0x113   : > { %693 = vadd.xlane.f32.xlu0 %v692_v45  ;;  %v2873_v62 = vmax.f32 %v571_v57, 0.0  ;;  %v722_v2 = vsel %vm649_vm2, %v641_v58, 0.0  ;;  %v579_v3 = vadd.f32 %v2799_v59, %v2683_v19  ;;  %v643_v45 = vmul.f32 %v2867_v22, %v2867_v22 }
 0x114   : > { %v2886_v0 = vmax.f32 %v574_v39, 0.0  ;;  %v725_v6 = vsel %vm649_vm2, %v642_v63, 0.0 }
 0x115   : > { %696 = vadd.xlane.f32.xlu1 %v695_v16  ;;  %v582_v16 = vadd.f32 %v2163_v4, %v2683_v19  ;;  %v645_v17 = vmul.f32 %v2873_v62, %v2873_v62  ;;  %v2891_v18 = vmax.f32 %v579_v3, 0.0  ;;  %v728_v59 = vsel %vm649_vm2, %v643_v45, 0.0 }
 0x116   : > { %v646_v19 = vmul.f32 %v2886_v0, %v2886_v0 }
 0x117   : > { %699 = vadd.xlane.f32.xlu0 %v698_v12  ;;  %v644_v12 = vmul.f32 %v2870_v60, %v2870_v60  ;;  %v2894_v20 = vmax.f32 %v582_v16, 0.0  ;;  %v734_v23 = vsel %vm649_vm2, %v645_v17, 0.0  ;;  %v647_v4 = vmul.f32 %v2891_v18, %v2891_v18 }
 0x118   : > { %v737_v8 = vsel %vm649_vm2, %v646_v19, 0.0 }
 0x119   : > { %702 = vadd.xlane.f32.xlu1 %v701_v26  ;;  %v731_v21 = vsel %vm649_vm2, %v644_v12, 0.0  ;;  %v648_v26 = vmul.f32 %v2894_v20, %v2894_v20  ;;  %v740_v29 = vsel %vm649_vm2, %v647_v4, 0.0 }
 0x11b   : > { %705 = vadd.xlane.f32.xlu0 %v704_v5  ;;  %v743_v61 = vsel %vm649_vm2, %v648_v26, 0.0 }
 0x11d   : > { %708 = vadd.xlane.f32.xlu1 %v707_v34 }
 0x11f   : > { %711 = vadd.xlane.f32.xlu0 %v710_v27 }
 0x121   : > { %714 = vadd.xlane.f32.xlu1 %v713_v56 }
 0x123   : > { %717 = vadd.xlane.f32.xlu0 %v716_v49 }
 0x125   : > { %720 = vadd.xlane.f32.xlu1 %v719_v35 }
 0x127   : > { %723 = vadd.xlane.f32.xlu0 %v722_v2 }
 0x129   : > { %726 = vadd.xlane.f32.xlu1 %v725_v6 }
 0x12b   : > { %729 = vadd.xlane.f32.xlu0 %v728_v59 }
 0x12d   : > { %732 = vadd.xlane.f32.xlu1 %v731_v21 }
 0x12f   : > { %735 = vadd.xlane.f32.xlu0 %v734_v23 }
 0x131   : > { %738 = vadd.xlane.f32.xlu1 %v737_v8 }
 0x133   : > { %741 = vadd.xlane.f32.xlu0 %v740_v29 }
 0x135   : > { %744 = vadd.xlane.f32.xlu1 %v743_v61 }
 0x183   : > { %v658_v5 = vpop.xlane.xlu1 %657 }
 0x184   : > { %v748_v34 = vmax.f32 %v658_v5, 1e-24  ;;  %v652_v37 = vpop.xlane.xlu0 %651 }
 0x185   : > { %v746_v27 = vmax.f32 %v652_v37, 1e-24 }
 0x186   : > { %2261 = vrsqrt.f32 %v748_v34 }
 0x187   : > { %v661_v42 = vpop.xlane.xlu1 %660  ;;  %2263 = vrsqrt.f32 %v746_v27 }
 0x188   : > { %v749_v43 = vmax.f32 %v661_v42, 1e-24  ;;  %v655_v46 = vpop.xlane.xlu0 %654 }
 0x189   : > { %v747_v52 = vmax.f32 %v655_v46, 1e-24 }
 0x18a   : > { %2265 = vrsqrt.f32 %v749_v43 }
 0x18b   : > { %2267 = vrsqrt.f32 %v747_v52 }
 0x18c   : > { %v664_v53 = vpop.xlane.xlu0 %663 }
 0x18d   : > { %v750_v56 = vmax.f32 %v664_v53, 1e-24 }
 0x18e   : > { %v667_v57 = vpop.xlane.xlu1 %666 }
 0x18f   : > { %2269 = vrsqrt.f32 %v750_v56  ;;  %v751_v58 = vmax.f32 %v667_v57, 1e-24 }
 0x190   : > { %v670_v49 = vpop.xlane.xlu0 %669  ;;  %v2262_v39 = vpop.eup %2261 }
 0x191   : > { %2271 = vrsqrt.f32 %v751_v58  ;;  %v752_v35 = vmax.f32 %v670_v49, 1e-24  ;;  %v2264_v63 = vpop.eup %2263  ;;  %v812_v19 = vmul.f32 %v2262_v39, %v2687_v25 }
 0x192   : > { %v673_v2 = vpop.xlane.xlu1 %672  ;;  %v810_v21 = vmul.f32 %v2264_v63, %v2690_v28 }
 0x193   : > { %2273 = vrsqrt.f32 %v752_v35  ;;  %v753_v3 = vmax.f32 %v673_v2, 1e-24 }
 0x194   : > { %v2266_v45 = vpop.eup %2265  ;;  %v676_v12 = vpop.xlane.xlu0 %675 }
 0x195   : > { %v2268_v16 = vpop.eup %2267  ;;  %v813_v6 = vmul.f32 %v2266_v45, %v2693_v30  ;;  %2275 = vrsqrt.f32 %v753_v3  ;;  %v754_v17 = vmax.f32 %v676_v12, 1e-24 }
 0x196   : > { %v679_v59 = vpop.xlane.xlu1 %678  ;;  %v811_v23 = vmul.f32 %v2268_v16, %v2697_v32 }
 0x197   : > { %2277 = vrsqrt.f32 %v754_v17  ;;  %v755_v4 = vmax.f32 %v679_v59, 1e-24  ;;  %v2913_v61 = vpack.c.bf16 %v813_v6, %v812_v19 }
 0x198   : > { %v682_v8 = vpop.xlane.xlu0 %681  ;;  %v2911_v26 = vpack.c.bf16 %v811_v23, %v810_v21 }
 0x199   : > { %v2270_v29 = vpop.eup %2269  ;;  %2279 = vrsqrt.f32 %v755_v4  ;;  %v756_v5 = vmax.f32 %v682_v8, 1e-24 }
 0x19a   : > { %v685_v30 = vpop.xlane.xlu1 %684  ;;  %2168 = vmatprep.mubr.msk.bf16.mxu1 %vm649_vm2, %v2911_v26  ;;  %v814_v32 = vmul.f32 %v2270_v29, %v2719_v51 }
 0x19b   : > { %v2272_v34 = vpop.eup %2271  ;;  %2281 = vrsqrt.f32 %v756_v5  ;;  %v757_v28 = vmax.f32 %v685_v30, 1e-24  ;;  %2169 = vmatmul.mubr.msk.bf16.vlgmr.msra.gmra.mrb[16].mxu1 %vm649_vm2, %v2913_v61 }
 0x19c   : > { %v688_v25 = vpop.xlane.xlu0 %687  ;;  %v815_v37 = vmul.f32 %v2272_v34, %v2725_v55 }
 0x19d   : > { %v2274_v27 = vpop.eup %2273  ;;  %2283 = vrsqrt.f32 %v757_v28  ;;  %v758_v42 = vmax.f32 %v688_v25, 1e-24 }
 0x19e   : > { %v691_v43 = vpop.xlane.xlu1 %690  ;;  %v2921_v46 = vpack.c.bf16 %v815_v37, %v814_v32  ;;  %v816_v57 = vmul.f32 %v2274_v27, %v2717_v50 }
 0x19f   : > { %v2276_v52 = vpop.eup %2275  ;;  %2285 = vrsqrt.f32 %v758_v42  ;;  %v759_v53 = vmax.f32 %v691_v43, 1e-24 }
 0x1a0   : > { %2172 = vmatprep.mubr.msk.bf16.mxu1 %vm649_vm2, %v2921_v46  ;;  %v694_v56 = vpop.xlane.xlu0 %693  ;;  %v817_v58 = vmul.f32 %v2276_v52, %v2723_v54 }
 0x1a1   : > { %v2278_v51 = vpop.eup %2277  ;;  %2287 = vrsqrt.f32 %v759_v53  ;;  %v760_v55 = vmax.f32 %v694_v56, 1e-24 }
 0x1a2   : > { %v697_v49 = vpop.xlane.xlu1 %696  ;;  %v2927_v35 = vpack.c.bf16 %v817_v58, %v816_v57  ;;  %v818_v3 = vmul.f32 %v2278_v51, %v2748_v10 }
 0x1a3   : > { %v2280_v39 = vpop.eup %2279  ;;  %2289 = vrsqrt.f32 %v760_v55  ;;  %v761_v2 = vmax.f32 %v697_v49, 1e-24 }
 0x1a4   : > { %2173 = vmatmul.mubr.msk.bf16.gmra.mrb[20].mxu1 %vm649_vm2, %v2927_v35  ;;  %v700_v63 = vpop.xlane.xlu0 %699  ;;  %v819_v45 = vmul.f32 %v2280_v39, %v2754_v14 }
 0x1a5   : > { %v2282_v50 = vpop.eup %2281  ;;  %2291 = vrsqrt.f32 %v761_v2  ;;  %v762_v54 = vmax.f32 %v700_v63, 1e-24 }
 0x1a6   : > { %v703_v12 = vpop.xlane.xlu1 %702  ;;  %v2933_v16 = vpack.c.bf16 %v819_v45, %v818_v3  ;;  %v820_v21 = vmul.f32 %v2282_v50, %v2746_v9 }
 0x1a7   : > { %v2284_v6 = vpop.eup %2283  ;;  %2293 = vrsqrt.f32 %v762_v54  ;;  %v763_v17 = vmax.f32 %v703_v12, 1e-24 }
 0x1a8   : > { %2176 = vmatprep.mubr.msk.bf16.mxu1 %vm649_vm2, %v2933_v16  ;;  %v706_v59 = vpop.xlane.xlu0 %705  ;;  %v821_v23 = vmul.f32 %v2284_v6, %v2752_v13 }
 0x1a9   : > { %v2286_v10 = vpop.eup %2285  ;;  %2295 = vrsqrt.f32 %v763_v17  ;;  %v764_v14 = vmax.f32 %v706_v59, 1e-24 }
 0x1aa   : > { %v709_v19 = vpop.xlane.xlu1 %708  ;;  %v2939_v4 = vpack.c.bf16 %v821_v23, %v820_v21  ;;  %v822_v30 = vmul.f32 %v2286_v10, %v2777_v41 }
 0x1ab   : > { %v2288_v8 = vpop.eup %2287  ;;  %2297 = vrsqrt.f32 %v764_v14  ;;  %v765_v29 = vmax.f32 %v709_v19, 1e-24 }
 0x1ac   : > { %2177 = vmatmul.mubr.msk.bf16.gmra.mrb[24].mxu1 %vm649_vm2, %v2939_v4  ;;  %v712_v5 = vpop.xlane.xlu0 %711  ;;  %v823_v34 = vmul.f32 %v2288_v8, %v2787_v48 }
 0x1ad   : > { %v2290_v9 = vpop.eup %2289  ;;  %2299 = vrsqrt.f32 %v765_v29  ;;  %v766_v13 = vmax.f32 %v712_v5, 1e-24 }
 0x1ae   : > { %v715_v28 = vpop.xlane.xlu1 %714  ;;  %v2945_v25 = vpack.c.bf16 %v823_v34, %v822_v30  ;;  %v824_v42 = vmul.f32 %v2290_v9, %v2775_v40 }
 0x1af   : > { %v2292_v32 = vpop.eup %2291  ;;  %2301 = vrsqrt.f32 %v766_v13  ;;  %v767_v37 = vmax.f32 %v715_v28, 1e-24 }
 0x1b0   : > { %2180 = vmatprep.mubr.msk.bf16.mxu1 %vm649_vm2, %v2945_v25  ;;  %v718_v27 = vpop.xlane.xlu0 %717  ;;  %v825_v43 = vmul.f32 %v2292_v32, %v2785_v47 }
 0x1b1   : > { %v2294_v41 = vpop.eup %2293  ;;  %2303 = vrsqrt.f32 %v767_v37  ;;  %v768_v48 = vmax.f32 %v718_v27, 1e-24 }
 0x1b2   : > { %v721_v52 = vpop.xlane.xlu1 %720  ;;  %v2951_v53 = vpack.c.bf16 %v825_v43, %v824_v42  ;;  %v826_v51 = vmul.f32 %v2294_v41, %v2781_v44 }
 0x1b3   : > { %v2296_v56 = vpop.eup %2295  ;;  %2305 = vrsqrt.f32 %v768_v48  ;;  %v769_v57 = vmax.f32 %v721_v52, 1e-24 }
 0x1b4   : > { %2181 = vmatmul.mubr.msk.bf16.gmra.mrb[28].mxu1 %vm649_vm2, %v2951_v53  ;;  %v724_v58 = vpop.xlane.xlu0 %723  ;;  %v827_v55 = vmul.f32 %v2296_v56, %v2805_v1 }
 0x1b5   : > { %v2298_v40 = vpop.eup %2297  ;;  %2307 = vrsqrt.f32 %v769_v57  ;;  %v770_v47 = vmax.f32 %v724_v58, 1e-24 }
 0x1b6   : > { %v727_v49 = vpop.xlane.xlu1 %726  ;;  %v850_v39 = vpack.c.bf16 %v827_v55, %v826_v51  ;;  %v828_v45 = vmul.f32 %v2298_v40, %v2811_v7 }
 0x1b7   : > { %v2300_v2 = vpop.eup %2299  ;;  %2309 = vrsqrt.f32 %v770_v47  ;;  %v771_v63 = vmax.f32 %v727_v49, 1e-24 }
 0x1b8   : > { %2184 = vmatprep.mubr.msk.bf16.mxu1 %vm649_vm2, %v850_v39  ;;  %2066 = vmatprep.subr.bf16.mxu0 %v850_v39  ;;  %v730_v3 = vpop.xlane.xlu0 %729  ;;  %v829_v50 = vmul.f32 %v2300_v2, %v2814_v11 }
 0x1b9   : > { %v2302_v54 = vpop.eup %2301  ;;  %2311 = vrsqrt.f32 %v771_v63  ;;  %v772_v44 = vmax.f32 %v730_v3, 1e-24  ;;  %2067 = vmatpush3.bf16.msra.mxu0 %v2911_v26 }
 0x1ba   : > { %v733_v1 = vpop.xlane.xlu1 %732  ;;  %v851_v12 = vpack.c.bf16 %v829_v50, %v828_v45  ;;  %v830_v21 = vmul.f32 %v2302_v54, %v2817_v15 }
 0x1bb   : > { %v2304_v6 = vpop.eup %2303  ;;  %2313 = vrsqrt.f32 %v772_v44  ;;  %v773_v17 = vmax.f32 %v733_v1, 1e-24 }
 0x1bc   : > { %2185 = vmatmul.mubr.msk.bf16.gmra.mrb[32].mxu1 %vm649_vm2, %v851_v12  ;;  %2068 = vmatprep.subr.bf16.mxu0 %v851_v12  ;;  %v736_v59 = vpop.xlane.xlu0 %735  ;;  %v831_v7 = vmul.f32 %v2304_v6, %v2835_v24 }
 0x1bd   : > { %v2306_v23 = vpop.eup %2305  ;;  %2315 = vrsqrt.f32 %v773_v17  ;;  %v774_v11 = vmax.f32 %v736_v59, 1e-24  ;;  %2069 = vmatpush3.bf16.msra.mxu0 %v2913_v61 }
 0x1be   : > { %v739_v10 = vpop.xlane.xlu1 %738  ;;  %v852_v26 = vpack.c.bf16 %v831_v7, %v830_v21  ;;  %v832_v29 = vmul.f32 %v2306_v23, %v2841_v31 }
 0x1bf   : > { %v2308_v14 = vpop.eup %2307  ;;  %2317 = vrsqrt.f32 %v774_v11  ;;  %v775_v19 = vmax.f32 %v739_v10, 1e-24 }
 0x1c0   : > { %2188 = vmatprep.mubr.msk.bf16.mxu1 %vm649_vm2, %v852_v26  ;;  %2070 = vmatprep.subr.bf16.mxu0 %v852_v26  ;;  %v742_v8 = vpop.xlane.xlu0 %741  ;;  %v833_v15 = vmul.f32 %v2308_v14, %v2844_v33 }
 0x1c1   : > { %v2310_v5 = vpop.eup %2309  ;;  %2319 = vrsqrt.f32 %v775_v19  ;;  %v776_v24 = vmax.f32 %v742_v8, 1e-24  ;;  %2071 = vmatpush3.bf16.msra.mxu0 %v2921_v46 }
 0x1c2   : > { %v745_v30 = vpop.xlane.xlu1 %744  ;;  %v853_v61 = vpack.c.bf16 %v833_v15, %v832_v29  ;;  %v834_v13 = vmul.f32 %v2310_v5, %v2847_v36 }
 0x1c3   : > { %v2312_v34 = vpop.eup %2311  ;;  %2321 = vrsqrt.f32 %v776_v24  ;;  %v777_v9 = vmax.f32 %v745_v30, 1e-24 }
 0x1c4   : > { %2189 = vmatmul.mubr.msk.bf16.gmra.mrb[36].mxu1 %vm649_vm2, %v853_v61  ;;  %2072 = vmatprep.subr.bf16.mxu0 %v853_v61  ;;  %v835_v28 = vmul.f32 %v2312_v34, %v2861_v38 }
 0x1c5   : > { %v2314_v31 = vpop.eup %2313  ;;  %2323 = vrsqrt.f32 %v777_v9  ;;  %2073 = vmatpush3.bf16.msra.mxu0 %v2927_v35 }
 0x1c6   : > { %v854_v33 = vpack.c.bf16 %v835_v28, %v834_v13  ;;  %v836_v46 = vmul.f32 %v2314_v31, %v2867_v22 }
 0x1c7   : > { %v2316_v32 = vpop.eup %2315 }
 0x1c8   : > { %2192 = vmatprep.mubr.msk.bf16.mxu1 %vm649_vm2, %v854_v33  ;;  %2074 = vmatprep.subr.bf16.mxu0 %v854_v33  ;;  %v837_v37 = vmul.f32 %v2316_v32, %v2870_v60 }
 0x1c9   : > { %v2318_v27 = vpop.eup %2317  ;;  %2075 = vmatpush3.bf16.msra.mxu0 %v2933_v16 }
 0x1ca   : > { %v855_v42 = vpack.c.bf16 %v837_v37, %v836_v46  ;;  %v838_v38 = vmul.f32 %v2318_v27, %v2873_v62  ;;  %v2990_v62 = vld [vmem:[%s3546_s4] ss:$0 sm:$0xff] }
 0x1cb   : > { %v2320_v36 = vpop.eup %2319 }
 0x1cc   : > { %2193 = vmatmul.mubr.msk.bf16.gmra.mrb[40].mxu1 %vm649_vm2, %v855_v42  ;;  %2076 = vmatprep.subr.bf16.mxu0 %v855_v42  ;;  %v839_v35 = vmul.f32 %v2320_v36, %v2886_v0 }
 0x1cd   : > { %v2322_v43 = vpop.eup %2321  ;;  %2077 = vmatpush3.bf16.msra.mxu0 %v2939_v4 }
 0x1ce   : > { %v856_v41 = vpack.c.bf16 %v839_v35, %v838_v38  ;;  %v840_v22 = vmul.f32 %v2322_v43, %v2891_v18 }
 0x1cf   : > { %v2324_v48 = vpop.eup %2323 }
 0x1d0   : > { %2196 = vmatprep.mubr.msk.bf16.mxu1 %vm649_vm2, %v856_v41  ;;  %2078 = vmatprep.subr.bf16.mxu0 %v856_v41  ;;  %v841_v60 = vmul.f32 %v2324_v48, %v2894_v20 }
 0x1d1   : > { %2079 = vmatpush3.bf16.msra.mxu0 %v2945_v25 }
 0x1d2   : > { %v857_v16 = vpack.c.bf16 %v841_v60, %v840_v22 }
 0x1d4   : > { %2197 = vmatmul.mubr.msk.bf16.gmra.mrb[44].mxu1 %vm649_vm2, %v857_v16  ;;  %2080 = vmatprep.subr.bf16.mxu0 %v857_v16 }
 0x1d5   : > { %2081 = vmatpush3.bf16.msra.mxu0 %v2951_v53 }
 0x26e   : > { %v2170_v0 = vpop.f32.mrb[16].mxu1 }
 0x26f   : > { %v2993_v4 = vadd.f32 %v2170_v0, %v2990_v62  ;;  %v963_v18 = vpop.f32.mrb[17].mxu1 }
 0x270   : > { %v2171_v52 = vpop.f32.mrb[18].mxu1  ;;  %v3000_v56 = vadd.f32 %v2990_v62, %v963_v18 }
 0x271   : > { %v2996_v20 = vadd.f32 %v2171_v52, %v2990_v62  ;;  %1094 = vmax.xlane.f32.xlu0 %v2993_v4  ;;  %v966_v25 = vpop.f32.mrb[19].mxu1 }
 0x272   : > { %v3004_v53 = vadd.f32 %v2990_v62, %v966_v25 }
 0x273   : > { %1096 = vmax.xlane.f32.xlu1 %v2996_v20 }
 0x275   : > { %1090 = vmax.xlane.f32.xlu0 %v3000_v56 }
 0x277   : > { %1092 = vmax.xlane.f32.xlu1 %v3004_v53  ;;  %v2174_v57 = vpop.f32.mrb[20].mxu1 }
 0x278   : > { %v3009_v58 = vadd.f32 %v2174_v57, %v2990_v62  ;;  %v979_v51 = vpop.f32.mrb[21].mxu1 }
 0x279   : > { %v2175_v55 = vpop.f32.mrb[22].mxu1  ;;  %v3016_v49 = vadd.f32 %v2990_v62, %v979_v51 }
 0x27a   : > { %v3012_v40 = vadd.f32 %v2175_v55, %v2990_v62  ;;  %1102 = vmax.xlane.f32.xlu0 %v3009_v58  ;;  %v982_v47 = vpop.f32.mrb[23].mxu1 }
 0x27b   : > { %v3020_v39 = vadd.f32 %v2990_v62, %v982_v47 }
 0x27c   : > { %1104 = vmax.xlane.f32.xlu1 %v3012_v40 }
 0x27e   : > { %1098 = vmax.xlane.f32.xlu0 %v3016_v49 }
 0x27f   : > { %v2178_v2 = vpop.f32.mrb[24].mxu1 }
 0x280   : > { %v3024_v63 = vadd.f32 %v2178_v2, %v2990_v62  ;;  %1100 = vmax.xlane.f32.xlu1 %v3020_v39  ;;  %v995_v3 = vpop.f32.mrb[25].mxu1 }
 0x281   : > { %v2179_v45 = vpop.f32.mrb[26].mxu1  ;;  %v3032_v44 = vadd.f32 %v2990_v62, %v995_v3 }
 0x282   : > { %v3028_v50 = vadd.f32 %v2179_v45, %v2990_v62  ;;  %1110 = vmax.xlane.f32.xlu0 %v3024_v63  ;;  %v998_v54 = vpop.f32.mrb[27].mxu1 }
 0x283   : > { %v3036_v1 = vadd.f32 %v2990_v62, %v998_v54 }
 0x284   : > { %1112 = vmax.xlane.f32.xlu1 %v3028_v50 }
 0x286   : > { %1106 = vmax.xlane.f32.xlu0 %v3032_v44 }
 0x287   : > { %v2182_v12 = vpop.f32.mrb[28].mxu1 }
 0x288   : > { %v3040_v6 = vadd.f32 %v2182_v12, %v2990_v62  ;;  %1108 = vmax.xlane.f32.xlu1 %v3036_v1  ;;  %v1011_v17 = vpop.f32.mrb[29].mxu1 }
 0x289   : > { %v3044_v59 = vadd.f32 %v2990_v62, %v1011_v17  ;;  %v2183_v21 = vpop.f32.mrb[30].mxu1 }
 0x28a   : > { %v3047_v7 = vadd.f32 %v2183_v21, %v2990_v62  ;;  %v1014_v23 = vpop.f32.mrb[31].mxu1 }
 0x28b   : > { %v3050_v11 = vadd.f32 %v2990_v62, %v1014_v23  ;;  %1114 = vmax.xlane.f32.xlu0 %v3044_v59 }
 0x28d   : > { %1116 = vmax.xlane.f32.xlu1 %v3050_v11 }
 0x28f   : > { %v2186_v10 = vpop.f32.mrb[32].mxu1 }
 0x290   : > { %v3055_v26 = vadd.f32 %v2186_v10, %v2990_v62  ;;  %v1027_v14 = vpop.f32.mrb[33].mxu1 }
 0x291   : > { %v2187_v19 = vpop.f32.mrb[34].mxu1  ;;  %v3062_v15 = vadd.f32 %v2990_v62, %v1027_v14 }
 0x292   : > { %v3058_v8 = vadd.f32 %v2187_v19, %v2990_v62  ;;  %1126 = vmax.xlane.f32.xlu0 %v3055_v26  ;;  %v1030_v29 = vpop.f32.mrb[35].mxu1 }
 0x293   : > { %v3066_v5 = vadd.f32 %v2990_v62, %v1030_v29 }
 0x294   : > { %1128 = vmax.xlane.f32.xlu1 %v3058_v8 }
 0x296   : > { %1122 = vmax.xlane.f32.xlu0 %v3062_v15 }
 0x297   : > { %v2190_v24 = vpop.f32.mrb[36].mxu1 }
 0x298   : > { %v3070_v30 = vadd.f32 %v2190_v24, %v2990_v62  ;;  %1124 = vmax.xlane.f32.xlu1 %v3066_v5  ;;  %v1043_v61 = vpop.f32.mrb[37].mxu1 }
 0x299   : > { %v2191_v34 = vpop.f32.mrb[38].mxu1  ;;  %v3078_v28 = vadd.f32 %v2990_v62, %v1043_v61 }
 0x29a   : > { %v3074_v9 = vadd.f32 %v2191_v34, %v2990_v62  ;;  %1134 = vmax.xlane.f32.xlu0 %v3070_v30  ;;  %v1046_v13 = vpop.f32.mrb[39].mxu1 }
 0x29b   : > { %v3082_v31 = vadd.f32 %v2990_v62, %v1046_v13 }
 0x29c   : > { %1136 = vmax.xlane.f32.xlu1 %v3074_v9 }
 0x29e   : > { %1130 = vmax.xlane.f32.xlu0 %v3078_v28 }
 0x29f   : > { %v2194_v33 = vpop.f32.mrb[40].mxu1 }
 0x2a0   : > { %v3086_v32 = vadd.f32 %v2194_v33, %v2990_v62  ;;  %1132 = vmax.xlane.f32.xlu1 %v3082_v31  ;;  %v1059_v46 = vpop.f32.mrb[41].mxu1 }
 0x2a1   : > { %v2195_v37 = vpop.f32.mrb[42].mxu1  ;;  %v3094_v36 = vadd.f32 %v2990_v62, %v1059_v46 }
 0x2a2   : > { %v3090_v27 = vadd.f32 %v2195_v37, %v2990_v62  ;;  %1142 = vmax.xlane.f32.xlu0 %v3086_v32  ;;  %v1062_v42 = vpop.f32.mrb[43].mxu1 }
 0x2a3   : > { %v3098_v38 = vadd.f32 %v2990_v62, %v1062_v42 }
 0x2a4   : > { %1144 = vmax.xlane.f32.xlu1 %v3090_v27 }
 0x2a6   : > { %1138 = vmax.xlane.f32.xlu0 %v3094_v36 }
 0x2a7   : > { %v2198_v35 = vpop.f32.mrb[44].mxu1 }
 0x2a8   : > { %v3102_v43 = vadd.f32 %v2198_v35, %v2990_v62  ;;  %1140 = vmax.xlane.f32.xlu1 %v3098_v38  ;;  %v1075_v41 = vpop.f32.mrb[45].mxu1 }
 0x2a9   : > { %v2199_v48 = vpop.f32.mrb[46].mxu1  ;;  %v3110_v16 = vadd.f32 %v2990_v62, %v1075_v41 }
 0x2aa   : > { %v3106_v22 = vadd.f32 %v2199_v48, %v2990_v62  ;;  %1150 = vmax.xlane.f32.xlu0 %v3102_v43  ;;  %v1078_v60 = vpop.f32.mrb[47].mxu1 }
 0x2ab   : > { %v3114_v0 = vadd.f32 %v2990_v62, %v1078_v60 }
 0x2ac   : > { %1152 = vmax.xlane.f32.xlu1 %v3106_v22 }
 0x2ae   : > { %1146 = vmax.xlane.f32.xlu0 %v3110_v16 }
 0x2b0   : > { %1148 = vmax.xlane.f32.xlu1 %v3114_v0 }
 0x2b2   : > { %1118 = vmax.xlane.f32.xlu0 %v3040_v6 }
 0x2b4   : > { %1120 = vmax.xlane.f32.xlu1 %v3047_v7 }
 0x2fe   : > { %v1095_v18 = vpop.xlane.xlu0 %1094 }
 0x2ff   : > { %v1156_v52 = vsub.f32 %v2993_v4, %v1095_v18 }
 0x300   : > { %v1097_v25 = vpop.xlane.xlu1 %1096 }
 0x301   : > { %v1190_v57 = vmul.f32 1.442695, %v1156_v52  ;;  %v1157_v51 = vsub.f32 %v2996_v20, %v1097_v25 }
 0x302   : > { %v1091_v55 = vpop.xlane.xlu0 %1090 }
 0x303   : > { %2325 = vpow2.f32 %v1190_v57  ;;  %v1192_v47 = vmul.f32 1.442695, %v1157_v51  ;;  %v1154_v62 = vsub.f32 %v3000_v56, %v1091_v55 }
 0x304   : > { %v1093_v2 = vpop.xlane.xlu1 %1092 }
 0x305   : > { %2327 = vpow2.f32 %v1192_v47  ;;  %v1186_v3 = vmul.f32 1.442695, %v1154_v62  ;;  %v1155_v45 = vsub.f32 %v3004_v53, %v1093_v2 }
 0x307   : > { %2329 = vpow2.f32 %v1186_v3  ;;  %v1188_v54 = vmul.f32 1.442695, %v1155_v45  ;;  %v1103_v12 = vpop.xlane.xlu0 %1102 }
 0x308   : > { %v1160_v17 = vsub.f32 %v3009_v58, %v1103_v12 }
 0x309   : > { %2331 = vpow2.f32 %v1188_v54  ;;  %v1105_v4 = vpop.xlane.xlu1 %1104 }
 0x30a   : > { %v1198_v21 = vmul.f32 1.442695, %v1160_v17  ;;  %v1161_v20 = vsub.f32 %v3012_v40, %v1105_v4 }
 0x30b   : > { %v1099_v23 = vpop.xlane.xlu0 %1098 }
 0x30c   : > { %2333 = vpow2.f32 %v1198_v21  ;;  %v1200_v10 = vmul.f32 1.442695, %v1161_v20  ;;  %v1158_v56 = vsub.f32 %v3016_v49, %v1099_v23 }
 0x30d   : > { %v3127_v14 = vpop.eup %2325  ;;  %v1101_v19 = vpop.xlane.xlu1 %1100 }
 0x30e   : > { %2335 = vpow2.f32 %v1200_v10  ;;  %v1194_v53 = vmul.f32 1.442695, %v1158_v56  ;;  %v1159_v29 = vsub.f32 %v3020_v39, %v1101_v19  ;;  %1254 = vadd.xlane.f32.xlu0 %v3127_v14 }
 0x30f   : > { %v3131_v58 = vpop.eup %2327  ;;  %v1111_v24 = vpop.xlane.xlu0 %1110 }
 0x310   : > { %2337 = vpow2.f32 %v1194_v53  ;;  %v1196_v61 = vmul.f32 1.442695, %v1159_v29  ;;  %v1164_v40 = vsub.f32 %v3024_v63, %v1111_v24  ;;  %1256 = vadd.xlane.f32.xlu1 %v3131_v58 }
 0x311   : > { %v3135_v34 = vpop.eup %2329  ;;  %v1113_v49 = vpop.xlane.xlu1 %1112 }
 0x312   : > { %2339 = vpow2.f32 %v1196_v61  ;;  %v1206_v13 = vmul.f32 1.442695, %v1164_v40  ;;  %v1165_v33 = vsub.f32 %v3028_v50, %v1113_v49  ;;  %1250 = vadd.xlane.f32.xlu0 %v3135_v34 }
 0x313   : > { %v3139_v39 = vpop.eup %2331  ;;  %v1107_v46 = vpop.xlane.xlu0 %1106 }
 0x314   : > { %2341 = vpow2.f32 %v1206_v13  ;;  %v1208_v37 = vmul.f32 1.442695, %v1165_v33  ;;  %v1162_v42 = vsub.f32 %v3032_v44, %v1107_v46  ;;  %1252 = vadd.xlane.f32.xlu1 %v3139_v39 }
 0x315   : > { %v1109_v63 = vpop.xlane.xlu1 %1108 }
 0x316   : > { %v3143_v35 = vpop.eup %2333  ;;  %2343 = vpow2.f32 %v1208_v37  ;;  %v1202_v41 = vmul.f32 1.442695, %v1162_v42  ;;  %v1163_v48 = vsub.f32 %v3036_v1, %v1109_v63 }
 0x317   : > { %1262 = vadd.xlane.f32.xlu0 %v3143_v35 }
 0x318   : > { %v3147_v50 = vpop.eup %2335  ;;  %2345 = vpow2.f32 %v1202_v41  ;;  %v1204_v60 = vmul.f32 1.442695, %v1163_v48  ;;  %v1115_v18 = vpop.xlane.xlu0 %1114 }
 0x319   : > { %v1166_v52 = vsub.f32 %v3044_v59, %v1115_v18  ;;  %1264 = vadd.xlane.f32.xlu1 %v3147_v50 }
 0x31a   : > { %v3151_v44 = vpop.eup %2337  ;;  %2347 = vpow2.f32 %v1204_v60  ;;  %v1117_v25 = vpop.xlane.xlu1 %1116 }
 0x31b   : > { %v1210_v57 = vmul.f32 1.442695, %v1166_v52  ;;  %v1167_v51 = vsub.f32 %v3050_v11, %v1117_v25  ;;  %1258 = vadd.xlane.f32.xlu0 %v3151_v44 }
 0x31c   : > { %v3155_v1 = vpop.eup %2339 }
 0x31d   : > { %2349 = vpow2.f32 %v1210_v57  ;;  %v1212_v55 = vmul.f32 1.442695, %v1167_v51  ;;  %1260 = vadd.xlane.f32.xlu1 %v3155_v1 }
 0x31e   : > { %v3158_v47 = vpop.eup %2341 }
 0x31f   : > { %2351 = vpow2.f32 %v1212_v55  ;;  %1270 = vadd.xlane.f32.xlu0 %v3158_v47  ;;  %v1127_v59 = vpop.xlane.xlu0 %1126 }
 0x320   : > { %v3161_v62 = vpop.eup %2343  ;;  %v1172_v2 = vsub.f32 %v3055_v26, %v1127_v59 }
 0x321   : > { %v1129_v3 = vpop.xlane.xlu1 %1128  ;;  %1272 = vadd.xlane.f32.xlu1 %v3161_v62 }
 0x322   : > { %v3165_v11 = vpop.eup %2345  ;;  %v1222_v45 = vmul.f32 1.442695, %v1172_v2  ;;  %v1173_v54 = vsub.f32 %v3058_v8, %v1129_v3 }
 0x323   : > { %1266 = vadd.xlane.f32.xlu0 %v3165_v11  ;;  %v1123_v12 = vpop.xlane.xlu0 %1122 }
 0x324   : > { %v3169_v17 = vpop.eup %2347  ;;  %2353 = vpow2.f32 %v1222_v45  ;;  %v1224_v4 = vmul.f32 1.442695, %v1173_v54  ;;  %v1170_v21 = vsub.f32 %v3062_v15, %v1123_v12 }
 0x325   : > { %v1125_v20 = vpop.xlane.xlu1 %1124  ;;  %1268 = vadd.xlane.f32.xlu1 %v3169_v17 }
 0x326   : > { %2355 = vpow2.f32 %v1224_v4  ;;  %v1218_v26 = vmul.f32 1.442695, %v1170_v21  ;;  %v1171_v23 = vsub.f32 %v3066_v5, %v1125_v20 }
 0x327   : > { %v3174_v10 = vpop.eup %2349  ;;  %v1135_v56 = vpop.xlane.xlu0 %1134 }
 0x328   : > { %2357 = vpow2.f32 %v1218_v26  ;;  %v1220_v8 = vmul.f32 1.442695, %v1171_v23  ;;  %v1176_v19 = vsub.f32 %v3070_v30, %v1135_v56  ;;  %1274 = vadd.xlane.f32.xlu0 %v3174_v10 }
 0x329   : > { %v3178_v53 = vpop.eup %2351  ;;  %v1137_v29 = vpop.xlane.xlu1 %1136 }
 0x32a   : > { %2359 = vpow2.f32 %v1220_v8  ;;  %v1230_v15 = vmul.f32 1.442695, %v1176_v19  ;;  %v1177_v24 = vsub.f32 %v3074_v9, %v1137_v29  ;;  %1276 = vadd.xlane.f32.xlu1 %v3178_v53 }
 0x32b   : > { %v1131_v61 = vpop.xlane.xlu0 %1130 }
 0x32c   : > { %2361 = vpow2.f32 %v1230_v15  ;;  %v1232_v5 = vmul.f32 1.442695, %v1177_v24  ;;  %v1174_v40 = vsub.f32 %v3078_v28, %v1131_v61 }
 0x32d   : > { %v1133_v49 = vpop.xlane.xlu1 %1132 }
 0x32e   : > { %v3183_v13 = vpop.eup %2353  ;;  %2363 = vpow2.f32 %v1232_v5  ;;  %v1226_v30 = vmul.f32 1.442695, %v1174_v40  ;;  %v1175_v33 = vsub.f32 %v3082_v31, %v1133_v49 }
 0x32f   : > { %1286 = vadd.xlane.f32.xlu0 %v3183_v13  ;;  %v1143_v46 = vpop.xlane.xlu0 %1142 }
 0x330   : > { %v3187_v37 = vpop.eup %2355  ;;  %2365 = vpow2.f32 %v1226_v30  ;;  %v1228_v9 = vmul.f32 1.442695, %v1175_v33  ;;  %v1180_v42 = vsub.f32 %v3086_v32, %v1143_v46 }
 0x331   : > { %v1145_v63 = vpop.xlane.xlu1 %1144  ;;  %1288 = vadd.xlane.f32.xlu1 %v3187_v37 }
 0x332   : > { %v3191_v28 = vpop.eup %2357  ;;  %2367 = vpow2.f32 %v1228_v9  ;;  %v1238_v41 = vmul.f32 1.442695, %v1180_v42  ;;  %v1181_v48 = vsub.f32 %v3090_v27, %v1145_v63 }
 0x333   : > { %1282 = vadd.xlane.f32.xlu0 %v3191_v28  ;;  %v1139_v31 = vpop.xlane.xlu0 %1138 }
 0x334   : > { %v3195_v60 = vpop.eup %2359  ;;  %2369 = vpow2.f32 %v1238_v41  ;;  %v1240_v18 = vmul.f32 1.442695, %v1181_v48  ;;  %v1178_v52 = vsub.f32 %v3094_v36, %v1139_v31 }
 0x335   : > { %v1141_v25 = vpop.xlane.xlu1 %1140  ;;  %1284 = vadd.xlane.f32.xlu1 %v3195_v60 }
 0x336   : > { %v3199_v32 = vpop.eup %2361  ;;  %2371 = vpow2.f32 %v1240_v18  ;;  %v1234_v57 = vmul.f32 1.442695, %v1178_v52  ;;  %v1179_v51 = vsub.f32 %v3098_v38, %v1141_v25 }
 0x337   : > { %1294 = vadd.xlane.f32.xlu0 %v3199_v32  ;;  %v1151_v27 = vpop.xlane.xlu0 %1150 }
 0x338   : > { %v3203_v55 = vpop.eup %2363  ;;  %2373 = vpow2.f32 %v1234_v57  ;;  %v1236_v59 = vmul.f32 1.442695, %v1179_v51  ;;  %v1184_v2 = vsub.f32 %v3102_v43, %v1151_v27 }
 0x339   : > { %v1153_v3 = vpop.xlane.xlu1 %1152  ;;  %1296 = vadd.xlane.f32.xlu1 %v3203_v55 }
 0x33a   : > { %v3207_v36 = vpop.eup %2365  ;;  %2375 = vpow2.f32 %v1236_v59  ;;  %v1246_v45 = vmul.f32 1.442695, %v1184_v2  ;;  %v1185_v54 = vsub.f32 %v3106_v22, %v1153_v3 }
 0x33b   : > { %1290 = vadd.xlane.f32.xlu0 %v3207_v36  ;;  %v1147_v38 = vpop.xlane.xlu0 %1146 }
 0x33c   : > { %v3211_v12 = vpop.eup %2367  ;;  %2377 = vpow2.f32 %v1246_v45  ;;  %v1248_v4 = vmul.f32 1.442695, %v1185_v54  ;;  %v1182_v21 = vsub.f32 %v3110_v16, %v1147_v38 }
 0x33d   : > { %1292 = vadd.xlane.f32.xlu1 %v3211_v12  ;;  %v1149_v43 = vpop.xlane.xlu1 %1148 }
 0x33e   : > { %v3215_v20 = vpop.eup %2369  ;;  %2379 = vpow2.f32 %v1248_v4  ;;  %v1242_v26 = vmul.f32 1.442695, %v1182_v21  ;;  %v1183_v23 = vsub.f32 %v3114_v0, %v1149_v43 }
 0x33f   : > { %1302 = vadd.xlane.f32.xlu0 %v3215_v20  ;;  %v1119_v22 = vpop.xlane.xlu0 %1118 }
 0x340   : > { %v3219_v56 = vpop.eup %2371  ;;  %2381 = vpow2.f32 %v1242_v26  ;;  %v1244_v8 = vmul.f32 1.442695, %v1183_v23  ;;  %v1168_v19 = vsub.f32 %v3040_v6, %v1119_v22 }
 0x341   : > { %1304 = vadd.xlane.f32.xlu1 %v3219_v56  ;;  %v1121_v16 = vpop.xlane.xlu1 %1120 }
 0x342   : > { %v3223_v29 = vpop.eup %2373  ;;  %2383 = vpow2.f32 %v1244_v8  ;;  %v1214_v15 = vmul.f32 1.442695, %v1168_v19  ;;  %v1169_v24 = vsub.f32 %v3047_v7, %v1121_v16 }
 0x343   : > { %1298 = vadd.xlane.f32.xlu0 %v3223_v29 }
 0x344   : > { %v3227_v0 = vpop.eup %2375  ;;  %2385 = vpow2.f32 %v1214_v15  ;;  %v1216_v61 = vmul.f32 1.442695, %v1169_v24 }
 0x345   : > { %1300 = vadd.xlane.f32.xlu1 %v3227_v0 }
 0x346   : > { %v3230_v5 = vpop.eup %2377  ;;  %2387 = vpow2.f32 %v1216_v61 }
 0x347   : > { %1310 = vadd.xlane.f32.xlu0 %v3230_v5 }
 0x348   : > { %v3233_v6 = vpop.eup %2379 }
 0x349   : > { %1312 = vadd.xlane.f32.xlu1 %v3233_v6 }
 0x34a   : > { %v3236_v40 = vpop.eup %2381 }
 0x34b   : > { %1306 = vadd.xlane.f32.xlu0 %v3236_v40 }
 0x34c   : > { %v3239_v7 = vpop.eup %2383 }
 0x34d   : > { %1308 = vadd.xlane.f32.xlu1 %v3239_v7 }
 0x34e   : > { %v3242_v49 = vpop.eup %2385 }
 0x34f   : > { %1278 = vadd.xlane.f32.xlu0 %v3242_v49 }
 0x350   : > { %v3245_v30 = vpop.eup %2387 }
 0x351   : > { %1280 = vadd.xlane.f32.xlu1 %v3245_v30 }
 0x39b   : > { %v1255_v33 = vpop.xlane.xlu0 %1254 }
 0x39d   : > { %v1257_v46 = vpop.xlane.xlu1 %1256 }
 0x39f   : > { %v1251_v9 = vpop.xlane.xlu0 %1250 }
 0x3a0   : > { %2389 = vrcp.f32 %v1251_v9 }
 0x3a1   : > { %2391 = vrcp.f32 %v1257_v46  ;;  %v1253_v42 = vpop.xlane.xlu1 %1252 }
 0x3a2   : > { %2393 = vrcp.f32 %v1253_v42 }
 0x3a3   : > { %2395 = vrcp.f32 %v1255_v33 }
 0x3a4   : > { %v1263_v63 = vpop.xlane.xlu0 %1262 }
 0x3a6   : > { %v1265_v41 = vpop.xlane.xlu1 %1264 }
 0x3a8   : > { %v1259_v48 = vpop.xlane.xlu0 %1258 }
 0x3a9   : > { %2397 = vrcp.f32 %v1259_v48 }
 0x3aa   : > { %v2390_v31 = vpop.eup %2389  ;;  %2399 = vrcp.f32 %v1265_v41  ;;  %v1261_v18 = vpop.xlane.xlu1 %1260 }
 0x3ab   : > { %v2392_v52 = vpop.eup %2391  ;;  %2401 = vrcp.f32 %v1261_v18  ;;  %v1315_v51 = vmul.f32 %v2390_v31, %v3135_v34 }
 0x3ac   : > { %v2394_v25 = vpop.eup %2393  ;;  %v1271_v57 = vpop.xlane.xlu0 %1270  ;;  %2403 = vrcp.f32 %v1263_v63  ;;  %v1321_v45 = vmul.f32 %v2392_v52, %v3131_v58 }
 0x3ad   : > { %v1317_v27 = vmul.f32 %v2394_v25, %v3139_v39  ;;  %v2396_v59 = vpop.eup %2395 }
 0x3ae   : > { %v1273_v2 = vpop.xlane.xlu1 %1272  ;;  %v1319_v38 = vmul.f32 %v2396_v59, %v3127_v14 }
 0x3af   : > { %v1378_v3 = vpack.c.bf16 %v1317_v27, %v1315_v51  ;;  %v1523_v19 = vadd.f32 %v1317_v27, %v1315_v51 }
 0x3b0   : > { %v1267_v54 = vpop.xlane.xlu0 %1266  ;;  %v1379_v43 = vpack.c.bf16 %v1321_v45, %v1319_v38 }
 0x3b1   : > { %2405 = vrcp.f32 %v1267_v54  ;;  %1394 = vxpose.xlu1.c.b16.start [1/8] %v1378_v3, 128  ;;  %v1524_v33 = vadd.f32 %v1523_v19, %v1319_v38 }
 0x3b2   : > { %2407 = vrcp.f32 %v1273_v2  ;;  %v1269_v4 = vpop.xlane.xlu1 %1268 }
 0x3b3   : > { %v2398_v21 = vpop.eup %2397  ;;  %2409 = vrcp.f32 %v1269_v4  ;;  %v1525_v48 = vadd.f32 %v1524_v33, %v1321_v45 }
 0x3b4   : > { %v2400_v26 = vpop.eup %2399  ;;  %2411 = vrcp.f32 %v1271_v57  ;;  %v1323_v39 = vmul.f32 %v2398_v21, %v3151_v44 }
 0x3b5   : > { %v2402_v23 = vpop.eup %2401  ;;  %1395 = vxpose.xlu1.c.b16.cont [2/8] %v1379_v43, 128  ;;  %v1275_v34 = vpop.xlane.xlu0 %1274  ;;  %v1329_v14 = vmul.f32 %v2400_v26, %v3147_v50 }
 0x3b6   : > { %v1325_v22 = vmul.f32 %v2402_v23, %v3155_v1  ;;  %v2404_v58 = vpop.eup %2403 }
 0x3b7   : > { %v1277_v8 = vpop.xlane.xlu1 %1276  ;;  %v1327_v15 = vmul.f32 %v2404_v58, %v3143_v35 }
 0x3b8   : > { %2413 = vrcp.f32 %v1277_v8  ;;  %v1380_v16 = vpack.c.bf16 %v1325_v22, %v1323_v39 }
 0x3b9   : > { %2415 = vrcp.f32 %v1275_v34  ;;  %v1381_v9 = vpack.c.bf16 %v1329_v14, %v1327_v15 }
 0x3ba   : > { %1396 = vxpose.xlu1.c.b16.cont [3/8] %v1380_v16, 128 }
 0x3bb   : > { %v2406_v24 = vpop.eup %2405 }
 0x3bc   : > { %v2408_v61 = vpop.eup %2407  ;;  %v1287_v46 = vpop.xlane.xlu0 %1286  ;;  %v1331_v1 = vmul.f32 %v2406_v24, %v3165_v11  ;;  %v1526_v11 = vadd.f32 %v1525_v48, %v1323_v39 }
 0x3bd   : > { %v2410_v42 = vpop.eup %2409  ;;  %v3259_v18 = vmul.f32 %v2408_v61, %v3161_v62 }
 0x3be   : > { %v1289_v44 = vpop.xlane.xlu1 %1288  ;;  %1397 = vxpose.xlu1.c.b16.cont [4/8] %v1381_v9, 128  ;;  %v1333_v63 = vmul.f32 %v2410_v42, %v3169_v17  ;;  %v2412_v41 = vpop.eup %2411  ;;  %v1527_v2 = vadd.f32 %v1526_v11, %v1325_v22 }
 0x3bf   : > { %v3262_v25 = vmul.f32 %v2412_v41, %v3158_v47 }
 0x3c0   : > { %v1283_v31 = vpop.xlane.xlu0 %1282  ;;  %v1382_v50 = vpack.c.bf16 %v1333_v63, %v1331_v1 }
 0x3c1   : > { %2417 = vrcp.f32 %v1283_v31  ;;  %v1383_v17 = vpack.c.bf16 %v3259_v18, %v3262_v25 }
 0x3c2   : > { %v2414_v35 = vpop.eup %2413  ;;  %2419 = vrcp.f32 %v1289_v44  ;;  %v1285_v52 = vpop.xlane.xlu1 %1284  ;;  %1398 = vxpose.xlu1.c.b16.cont [5/8] %v1382_v50, 128 }
 0x3c3   : > { %v2416_v57 = vpop.eup %2415  ;;  %2421 = vrcp.f32 %v1285_v52  ;;  %v3267_v27 = vmul.f32 %v2414_v35, %v3178_v53  ;;  %v1528_v53 = vadd.f32 %v1527_v2, %v1327_v15 }
 0x3c4   : > { %v1295_v51 = vpop.xlane.xlu0 %1294  ;;  %2423 = vrcp.f32 %v1287_v46  ;;  %v3270_v59 = vmul.f32 %v2416_v57, %v3174_v10 }
 0x3c5   : > { %v1529_v34 = vadd.f32 %v1528_v53, %v1329_v14 }
 0x3c6   : > { %v1297_v62 = vpop.xlane.xlu1 %1296  ;;  %1399 = vxpose.xlu1.c.b16.cont [6/8] %v1383_v17, 128  ;;  %v1384_v47 = vpack.c.bf16 %v3267_v27, %v3270_v59 }
 0x3c7   : > { %v1530_v16 = vadd.f32 %v1529_v34, %v1331_v1 }
 0x3c8   : > { %v1291_v3 = vpop.xlane.xlu0 %1290 }
 0x3c9   : > { %2425 = vrcp.f32 %v1291_v3  ;;  %v1531_v9 = vadd.f32 %v1530_v16, %v1333_v63 }
 0x3ca   : > { %2427 = vrcp.f32 %v1297_v62  ;;  %v1293_v45 = vpop.xlane.xlu1 %1292  ;;  %1400 = vxpose.xlu1.c.b16.cont [7/8] %v1384_v47, 128 }
 0x3cb   : > { %v2418_v54 = vpop.eup %2417  ;;  %2429 = vrcp.f32 %v1293_v45  ;;  %v1532_v50 = vadd.f32 %v1531_v9, %v3262_v25 }
 0x3cc   : > { %v2420_v38 = vpop.eup %2419  ;;  %v1303_v4 = vpop.xlane.xlu0 %1302  ;;  %2431 = vrcp.f32 %v1295_v51  ;;  %v3275_v10 = vmul.f32 %v2418_v54, %v3191_v28 }
 0x3cd   : > { %v2422_v21 = vpop.eup %2421  ;;  %v3283_v58 = vmul.f32 %v2420_v38, %v3187_v37 }
 0x3ce   : > { %v1305_v43 = vpop.xlane.xlu1 %1304  ;;  %v3278_v26 = vmul.f32 %v2422_v21, %v3195_v60  ;;  %v2424_v23 = vpop.eup %2423 }
 0x3cf   : > { %v3286_v19 = vmul.f32 %v2424_v23, %v3183_v13 }
 0x3d0   : > { %v1299_v39 = vpop.xlane.xlu0 %1298  ;;  %v1386_v22 = vpack.c.bf16 %v3278_v26, %v3275_v10 }
 0x3d1   : > { %2433 = vrcp.f32 %v1299_v39  ;;  %v1387_v14 = vpack.c.bf16 %v3283_v58, %v3286_v19 }
 0x3d2   : > { %2435 = vrcp.f32 %v1305_v43  ;;  %v1301_v8 = vpop.xlane.xlu1 %1300  ;;  %1410 = vxpose.xlu0.c.b16.start [1/8] %v1386_v22, 128 }
 0x3d3   : > { %v2426_v28 = vpop.eup %2425  ;;  %2437 = vrcp.f32 %v1301_v8 }
 0x3d4   : > { %v2428_v60 = vpop.eup %2427  ;;  %v1311_v15 = vpop.xlane.xlu0 %1310  ;;  %2439 = vrcp.f32 %v1303_v4  ;;  %v1355_v37 = vmul.f32 %v2426_v28, %v3207_v36 }
 0x3d5   : > { %v2430_v24 = vpop.eup %2429  ;;  %v1361_v44 = vmul.f32 %v2428_v60, %v3203_v55 }
 0x3d6   : > { %v1313_v61 = vpop.xlane.xlu1 %1312  ;;  %1411 = vxpose.xlu0.c.b16.cont [2/8] %v1387_v14, 128  ;;  %v1357_v33 = vmul.f32 %v2430_v24, %v3211_v12  ;;  %v2432_v46 = vpop.eup %2431  ;;  %v1560_v24 = vlaneseq }
 0x3d7   : > { %v1359_v41 = vmul.f32 %v2432_v46, %v3199_v32  ;;  %v1533_v32 = vadd.f32 %v1532_v50, %v3259_v18 }
 0x3d8   : > { %v1307_v13 = vpop.xlane.xlu0 %1306  ;;  %v1388_v42 = vpack.c.bf16 %v1357_v33, %v1355_v37  ;;  %v1561_v46 = vshrl.u32 %v1560_v24, 7 }
 0x3d9   : > { %2441 = vrcp.f32 %v1307_v13  ;;  %v1389_v12 = vpack.c.bf16 %v1361_v44, %v1359_v41  ;;  %v1534_v2 = vadd.f32 %v1533_v32, %v3270_v59 }
 0x3da   : > { %2443 = vrcp.f32 %v1313_v61  ;;  %v1309_v1 = vpop.xlane.xlu1 %1308  ;;  %1412 = vxpose.xlu0.c.b16.cont [3/8] %v1388_v42, 128  ;;  %v1563_v13 = vadd.s32 16, %v1561_v46  ;;  %v1564_v42 = vadd.s32 24, %v1561_v46 }
 0x3db   : > { %v2434_v48 = vpop.eup %2433  ;;  %2445 = vrcp.f32 %v1309_v1  ;;  %v1535_v18 = vadd.f32 %v1534_v2, %v3267_v27  ;;  %v1573_v2 = vadd.s32 96, %v1561_v46 }
 0x3dc   : > { %v2436_v31 = vpop.eup %2435  ;;  %2447 = vrcp.f32 %v1311_v15  ;;  %v1279_v36 = vpop.xlane.xlu0 %1278  ;;  %v1363_v55 = vmul.f32 %v2434_v48, %v3223_v29  ;;  %v1565_v48 = vadd.s32 32, %v1561_v46 }
 0x3dd   : > { %v2438_v35 = vpop.eup %2437  ;;  %2449 = vrcp.f32 %v1279_v36  ;;  %v1369_v51 = vmul.f32 %v2436_v31, %v3219_v56  ;;  %v1566_v31 = vadd.s32 40, %v1561_v46 }
 0x3de   : > { %v1281_v63 = vpop.xlane.xlu1 %1280  ;;  %1413 = vxpose.xlu0.c.b16.cont [4/8] %v1389_v12, 128  ;;  %v1365_v52 = vmul.f32 %v2438_v35, %v3227_v0  ;;  %v2440_v57 = vpop.eup %2439  ;;  %v1567_v12 = vadd.s32 48, %v1561_v46  ;;  %v1568_v35 = vadd.s32 56, %v1561_v46 }
 0x3df   : > { %2451 = vrcp.f32 %v1281_v63  ;;  %v1367_v25 = vmul.f32 %v2440_v57, %v3215_v20  ;;  %v1570_v57 = vadd.s32 72, %v1561_v46 }
 0x3e0   : > { %v1390_v11 = vpack.c.bf16 %v1365_v52, %v1363_v55 }
 0x3e1   : > { %v1391_v3 = vpack.c.bf16 %v1369_v51, %v1367_v25 }
 0x3e2   : > { %1414 = vxpose.xlu0.c.b16.cont [5/8] %v1390_v11, 128 }
 0x3e3   : > { %v2442_v17 = vpop.eup %2441 }
 0x3e4   : > { %v2444_v62 = vpop.eup %2443  ;;  %v1371_v29 = vmul.f32 %v2442_v17, %v3236_v40 }
 0x3e5   : > { %v2446_v47 = vpop.eup %2445  ;;  %v1377_v56 = vmul.f32 %v2444_v62, %v3233_v6 }
 0x3e6   : > { %v2448_v45 = vpop.eup %2447  ;;  %1415 = vxpose.xlu0.c.b16.cont [6/8] %v1391_v3, 128  ;;  %v1373_v0 = vmul.f32 %v2446_v47, %v3239_v7  ;;  %v1574_v3 = vadd.s32 104, %v1561_v46 }
 0x3e7   : > { %v2450_v54 = vpop.eup %2449  ;;  %v1375_v59 = vmul.f32 %v2448_v45, %v3230_v5 }
 0x3e8   : > { %v1392_v38 = vpack.c.bf16 %v1373_v0, %v1371_v29  ;;  %v1343_v20 = vmul.f32 %v2450_v54, %v3242_v49 }
 0x3e9   : > { %v2452_v53 = vpop.eup %2451  ;;  %v1393_v43 = vpack.c.bf16 %v1377_v56, %v1375_v59 }
 0x3ea   : > { %1416 = vxpose.xlu0.c.b16.cont [7/8] %v1392_v38, 128  ;;  %v1345_v4 = vmul.f32 %v2452_v53, %v3245_v30  ;;  %v1536_v21 = vadd.f32 %v1535_v18, %v1343_v20 }
 0x3ec   : > { %v1385_v23 = vpack.c.bf16 %v1345_v4, %v1343_v20  ;;  %v1537_v40 = vadd.f32 %v1536_v21, %v1345_v4 }
 0x3ee   : > { %1417 = vxpose.xlu0.c.b16.end [8/8] %v1393_v43, 128  ;;  %v1538_v7 = vadd.f32 %v1537_v40, %v3275_v10  ;;  %1401 = vxpose.xlu1.c.b16.end [8/8] %v1385_v23, 128 }
 0x3f0   : > { %v1539_v27 = vadd.f32 %v1538_v7, %v3278_v26 }
 0x3f2   : > { %v1540_v6 = vadd.f32 %v1539_v27, %v3286_v19  ;;  %v3312_v19 = vand.u32 127, %v1560_v24 }
 0x3f4   : > { %v1541_v49 = vadd.f32 %v1540_v6, %v3283_v58  ;;  %v1562_v58 = vadd.s32 8, %v1561_v46  ;;  %vm1579_vm3 = vcmp.eq.s32.totalorder %v1561_v46, %v3312_v19  ;;  %vm1581_vm5 = vcmp.eq.s32.totalorder %v1563_v13, %v3312_v19 }
 0x3f5   : > { %vm1582_vm6 = vcmp.eq.s32.totalorder %v1564_v42, %v3312_v19  ;;  %vm1583_vm7 = vcmp.eq.s32.totalorder %v1565_v48, %v3312_v19  ;;  %vm1584_vm8 = vcmp.eq.s32.totalorder %v1566_v31, %v3312_v19  ;;  %vm1585_vm9 = vcmp.eq.s32.totalorder %v1567_v12, %v3312_v19 }
 0x3f6   : > { %v1542_v34 = vadd.f32 %v1541_v49, %v1355_v37  ;;  %vm1580_vm4 = vcmp.eq.s32.totalorder %v1562_v58, %v3312_v19  ;;  %vm1586_vm10 = vcmp.eq.s32.totalorder %v1568_v35, %v3312_v19  ;;  %vm1588_vm12 = vcmp.eq.s32.totalorder %v1570_v57, %v3312_v19 }
 0x3f7   : > { %vm1591_vm15 = vcmp.eq.s32.totalorder %v1573_v2, %v3312_v19  ;;  %vm1592_vm0 = vcmp.eq.s32.totalorder %v1574_v3, %v3312_v19  ;;  %v1648_v2 = vld [vmem:[%s3547_s5 + $0x28] sm:$0xff] }
 0x3f8   : > { %v1543_v39 = vadd.f32 %v1542_v34, %v1357_v33 }
 0x3fa   : > { %v1544_v22 = vadd.f32 %v1543_v39, %v1359_v41 }
 0x3fc   : > { %v1545_v5 = vadd.f32 %v1544_v22, %v1361_v44 }
 0x3fe   : > { %v1546_v8 = vadd.f32 %v1545_v5, %v1363_v55 }
 0x400   : > { %v1547_v30 = vadd.f32 %v1546_v8, %v1365_v52  ;;  %v1569_v52 = vadd.s32 64, %v1561_v46  ;;  %v1643_v8 = vld [vmem:[%s3547_s5] sm:$0xff] }
 0x402   : > { %v1548_v28 = vadd.f32 %v1547_v30, %v1367_v25  ;;  %vm1587_vm11 = vcmp.eq.s32.totalorder %v1569_v52, %v3312_v19  ;;  %v1572_v25 = vadd.s32 88, %v1561_v46 }
 0x404   : > { %v1549_v60 = vadd.f32 %v1548_v28, %v1369_v51  ;;  %v1571_v51 = vadd.s32 80, %v1561_v46  ;;  %vm1590_vm14 = vcmp.eq.s32.totalorder %v1572_v25, %v3312_v19 }
 0x406   : > { %v1550_v16 = vadd.f32 %v1549_v60, %v1371_v29  ;;  %vm1589_vm13 = vcmp.eq.s32.totalorder %v1571_v51, %v3312_v19  ;;  %v1575_v29 = vadd.s32 112, %v1561_v46  ;;  %v1644_v60 = vld [vmem:[%s3547_s5 + $0x8] sm:$0xff] }
 0x408   : > { %v1551_v15 = vadd.f32 %v1550_v16, %v1373_v0  ;;  %v1576_v0 = vadd.s32 120, %v1561_v46  ;;  %vm1593_vm1 = vcmp.eq.s32.totalorder %v1575_v29, %v3312_v19 }
 0x40a   : > { %v1552_v14 = vadd.f32 %v1551_v15, %v1375_v59 }
 0x40c   : > { %v1553_v10 = vadd.f32 %v1552_v14, %v1377_v56 }
 0x40e   : > { %v1554_v61 = vrot.slane %v1553_v10, 4 }
 0x410   : > { %v1555_v26 = vadd.f32 %v1554_v61, %v1553_v10 }
 0x412   : > { %v1556_v9 = vrot.slane %v1555_v26, 2 }
 0x414   : > { %v1557_v37 = vadd.f32 %v1556_v9, %v1555_v26 }
 0x416   : > { %v1558_v33 = vrot.slane %v1557_v37, 1 }
 0x418   : > { %v1559_v44 = vadd.f32 %v1558_v33, %v1557_v37  ;;  %v1645_v37 = vld [vmem:[%s3547_s5 + $0x10] sm:$0xff] }
 0x41a   : > { %v1595_v1 = vsel %vm1579_vm3, %v1559_v44, 0.0  ;;  %v1596_v41 = vsel %vm1580_vm4, %v1559_v44, 0.0  ;;  %v1597_v50 = vsel %vm1581_vm5, %v1559_v44, 0.0  ;;  %v1598_v36 = vsel %vm1582_vm6, %v1559_v44, 0.0 }
 0x41b   : > { %1611 = vadd.xlane.f32.xlu0 %v1595_v1  ;;  %1613 = vadd.xlane.f32.xlu1 %v1596_v41  ;;  %v1599_v63 = vsel %vm1583_vm7, %v1559_v44, 0.0  ;;  %v1600_v55 = vsel %vm1584_vm8, %v1559_v44, 0.0  ;;  %v1601_v32 = vsel %vm1585_vm9, %v1559_v44, 0.0  ;;  %v1602_v11 = vsel %vm1586_vm10, %v1559_v44, 0.0  ;;  %v1646_v1 = vld [vmem:[%s3547_s5 + $0x18] sm:$0xff] }
 0x41c   : > { %v1603_v17 = vsel %vm1587_vm11, %v1559_v44, 0.0  ;;  %v1604_v62 = vsel %vm1588_vm12, %v1559_v44, 0.0  ;;  %v1605_v47 = vsel %vm1589_vm13, %v1559_v44, 0.0  ;;  %v1606_v45 = vsel %vm1590_vm14, %v1559_v44, 0.0 }
 0x41d   : > { %v1607_v54 = vsel %vm1591_vm15, %v1559_v44, 0.0  ;;  %v1608_v18 = vsel %vm1592_vm0, %v1559_v44, 0.0  ;;  %vm1594_vm3 = vcmp.eq.s32.totalorder %v1576_v0, %v3312_v19  ;;  %v1609_v38 = vsel %vm1593_vm1, %v1559_v44, 0.0 }
 0x41e   : > { %v1610_v56 = vsel %vm1594_vm3, %v1559_v44, 0.0 }
 0x41f   : > { %1615 = vadd.xlane.f32.xlu0 %v1597_v50  ;;  %1617 = vadd.xlane.f32.xlu1 %v1598_v36 }
 0x423   : > { %1619 = vadd.xlane.f32.xlu0 %v1599_v63  ;;  %1621 = vadd.xlane.f32.xlu1 %v1600_v55 }
 0x427   : > { %1623 = vadd.xlane.f32.xlu0 %v1601_v32  ;;  %1625 = vadd.xlane.f32.xlu1 %v1602_v11  ;;  %v1647_v11 = vld [vmem:[%s3547_s5 + $0x20] sm:$0xff] }
 0x42b   : > { %1627 = vadd.xlane.f32.xlu0 %v1603_v17  ;;  %1629 = vadd.xlane.f32.xlu1 %v1604_v62 }
 0x42f   : > { %1631 = vadd.xlane.f32.xlu0 %v1605_v47  ;;  %1633 = vadd.xlane.f32.xlu1 %v1606_v45 }
 0x433   : > { %1635 = vadd.xlane.f32.xlu0 %v1607_v54  ;;  %1637 = vadd.xlane.f32.xlu1 %v1608_v18 }
 0x437   : > { %1639 = vadd.xlane.f32.xlu0 %v1609_v38  ;;  %1641 = vadd.xlane.f32.xlu1 %v1610_v56 }
 0x438   : > { %v1418_v20 = vpop.trf.xlu0  ;;  %v1402_v53 = vpop.trf.xlu1 }
 0x439   : > { %1458 = vmatprep.mubr.bf16.mxu0 %v1418_v20 }
 0x43a   : > { %1459 = vmatmul.mubr.bf16.vlgmr.msra.gmra.mrb[16].mxu0 %v1402_v53 }
 0x43c   : > { %v1419_v59 = vpop.trf.xlu0  ;;  %v1403_v4 = vpop.trf.xlu1 }
 0x43d   : > { %1466 = vmatprep.mubr.bf16.mxu0 %v1419_v59 }
 0x440   : > { %v1420_v21 = vpop.trf.xlu0  ;;  %v1404_v43 = vpop.trf.xlu1 }
 0x442   : > { %1467 = vmatmul.mubr.bf16.gmra.mrb[20].mxu0 %v1403_v4  ;;  %v1649_v4 = vld [vmem:[%s3547_s5 + $0x30] sm:$0xff] }
 0x443   : > { %1474 = vmatprep.mubr.bf16.mxu0 %v1420_v21 }
 0x444   : > { %v1421_v23 = vpop.trf.xlu0  ;;  %v1405_v40 = vpop.trf.xlu1 }
 0x448   : > { %v1422_v7 = vpop.trf.xlu0  ;;  %v1406_v27 = vpop.trf.xlu1 }
 0x44a   : > { %1475 = vmatmul.mubr.bf16.gmra.mrb[24].mxu0 %v1404_v43 }
 0x44b   : > { %1482 = vmatprep.mubr.bf16.mxu0 %v1421_v23 }
 0x44c   : > { %v1423_v6 = vpop.trf.xlu0  ;;  %v1407_v49 = vpop.trf.xlu1 }
 0x450   : > { %v1424_v34 = vpop.trf.xlu0  ;;  %v1408_v39 = vpop.trf.xlu1 }
 0x452   : > { %1483 = vmatmul.mubr.bf16.gmra.mrb[28].mxu0 %v1405_v40 }
 0x453   : > { %1490 = vmatprep.mubr.bf16.mxu0 %v1422_v7  ;;  %v1650_v7 = vld [vmem:[%s3547_s5 + $0x38] sm:$0xff] }
 0x454   : > { %v1425_v22 = vpop.trf.xlu0  ;;  %v1409_v5 = vpop.trf.xlu1 }
 0x45a   : > { %1491 = vmatmul.mubr.bf16.gmra.mrb[32].mxu0 %v1406_v27 }
 0x45b   : > { %1498 = vmatprep.mubr.bf16.mxu0 %v1423_v6 }
 0x462   : > { %1499 = vmatmul.mubr.bf16.gmra.mrb[36].mxu0 %v1407_v49 }
 0x463   : > { %1506 = vmatprep.mubr.bf16.mxu0 %v1424_v34 }
 0x46a   : > { %1507 = vmatmul.mubr.bf16.gmra.mrb[40].mxu0 %v1408_v39 }
 0x46b   : > { %1514 = vmatprep.mubr.bf16.mxu0 %v1425_v22 }
 0x472   : > { %1515 = vmatmul.mubr.bf16.gmra.mrb[44].mxu0 %v1409_v5 }
 0x4a8   : > { %v1612_v30 = vpop.xlane.xlu0 %1611  ;;  %v1614_v16 = vpop.xlane.xlu1 %1613 }
 0x4a9   : > { %v1659_v14 = vmul.f32 %v1643_v8, %v1612_v30  ;;  %v1660_v46 = vmul.f32 %v1644_v60, %v1614_v16 }
 0x4ac   : > { %v1616_v33 = vpop.xlane.xlu0 %1615  ;;  %v1618_v41 = vpop.xlane.xlu1 %1617 }
 0x4ad   : > { %v1661_v31 = vmul.f32 %v1645_v37, %v1616_v33  ;;  %v1662_v63 = vmul.f32 %v1646_v1, %v1618_v41 }
 0x4b0   : > { %v1620_v51 = vpop.xlane.xlu0 %1619  ;;  %v1622_v3 = vpop.xlane.xlu1 %1621 }
 0x4b1   : > { %v1663_v45 = vmul.f32 %v1647_v11, %v1620_v51  ;;  %v1664_v38 = vmul.f32 %v1648_v2, %v1622_v3 }
 0x4b4   : > { %v1624_v21 = vpop.xlane.xlu0 %1623  ;;  %v1626_v27 = vpop.xlane.xlu1 %1625 }
 0x4b5   : > { %v1665_v49 = vmul.f32 %v1649_v4, %v1624_v21  ;;  %v1666_v8 = vmul.f32 %v1650_v7, %v1626_v27  ;;  %v1656_v21 = vld [vmem:[%s3547_s5 + $0x68] sm:$0xff] }
 0x50d   : > { %v2082_v28 = vpop.f32.mrb[16].mxu0 }
 0x50e   : > { %v2083_v15 = vpop.f32.mrb[17].mxu0 }
 0x50f   : > { %v2084_v24 = vadd.f32 %v2083_v15, %v2082_v28  ;;  %v2085_v10 = vpop.f32.mrb[18].mxu0  ;;  %v1651_v15 = vld [vmem:[%s3547_s5 + $0x40] sm:$0xff] }
 0x510   : > { %v2086_v61 = vpop.f32.mrb[19].mxu0 }
 0x511   : > { %v3336_v26 = vsub.f32 %v2084_v24, %v1659_v14  ;;  %v2087_v9 = vadd.f32 %v2086_v61, %v2085_v10  ;;  %v1628_v14 = vpop.xlane.xlu0 %1627 }
 0x512   : > { %v1667_v37 = vmul.f32 %v1651_v15, %v1628_v14 }
 0x513   : > { %v3338_v19 = vsub.f32 %v2087_v9, %v1660_v46  ;;  %v1691_v58 = vmul.f32 %v3336_v26, %v3336_v26  ;;  %v1652_v46 = vld [vmem:[%s3547_s5 + $0x48] sm:$0xff]  ;;  %v1630_v9 = vpop.xlane.xlu1 %1629 }
 0x514   : > { %v1668_v1 = vmul.f32 %v1652_v46, %v1630_v9 }
 0x515   : > { %v2088_v13 = vpop.f32.mrb[20].mxu0  ;;  %v1707_v42 = vsel %vm649_vm2, %v1691_v58, 0.0  ;;  %v1692_v44 = vmul.f32 %v3338_v19, %v3338_v19 }
 0x516   : > { %v2089_v48 = vpop.f32.mrb[21].mxu0  ;;  %1708 = vadd.xlane.f32.xlu0 %v1707_v42 }
 0x517   : > { %v2090_v50 = vadd.f32 %v2089_v48, %v2088_v13  ;;  %v2091_v36 = vpop.f32.mrb[22].mxu0  ;;  %v1710_v12 = vsel %vm649_vm2, %v1692_v44, 0.0  ;;  %v1634_v11 = vpop.xlane.xlu1 %1633 }
 0x518   : > { %1711 = vadd.xlane.f32.xlu1 %v1710_v12  ;;  %v2092_v35 = vpop.f32.mrb[23].mxu0  ;;  %v1632_v12 = vpop.xlane.xlu0 %1631 }
 0x519   : > { %v3352_v55 = vsub.f32 %v2090_v50, %v1661_v31  ;;  %v2093_v52 = vadd.f32 %v2092_v35, %v2091_v36  ;;  %v1653_v36 = vld [vmem:[%s3547_s5 + $0x50] sm:$0xff] }
 0x51b   : > { %v3354_v57 = vsub.f32 %v2093_v52, %v1662_v63  ;;  %v1693_v32 = vmul.f32 %v3352_v55, %v3352_v55 }
 0x51d   : > { %v2094_v25 = vpop.f32.mrb[24].mxu0  ;;  %v1713_v17 = vsel %vm649_vm2, %v1693_v32, 0.0  ;;  %v1694_v62 = vmul.f32 %v3354_v57, %v3354_v57  ;;  %v1654_v32 = vld [vmem:[%s3547_s5 + $0x58] sm:$0xff] }
 0x51e   : > { %v2095_v47 = vpop.f32.mrb[25].mxu0  ;;  %1714 = vadd.xlane.f32.xlu0 %v1713_v17 }
 0x51f   : > { %v2096_v29 = vadd.f32 %v2095_v47, %v2094_v25  ;;  %v2097_v0 = vpop.f32.mrb[26].mxu0  ;;  %v1716_v54 = vsel %vm649_vm2, %v1694_v62, 0.0  ;;  %v1669_v25 = vmul.f32 %v1653_v36, %v1632_v12  ;;  %v1670_v47 = vmul.f32 %v1654_v32, %v1634_v11 }
 0x520   : > { %1717 = vadd.xlane.f32.xlu1 %v1716_v54  ;;  %v2098_v18 = vpop.f32.mrb[27].mxu0 }
 0x521   : > { %v3368_v56 = vsub.f32 %v2096_v29, %v1663_v45  ;;  %v2099_v20 = vadd.f32 %v2098_v18, %v2097_v0  ;;  %v1655_v18 = vld [vmem:[%s3547_s5 + $0x60] sm:$0xff] }
 0x523   : > { %v3370_v53 = vsub.f32 %v2099_v20, %v1664_v38  ;;  %v1695_v59 = vmul.f32 %v3368_v56, %v3368_v56  ;;  %v1636_v38 = vpop.xlane.xlu0 %1635 }
 0x525   : > { %v2100_v43 = vpop.f32.mrb[28].mxu0  ;;  %v1719_v23 = vsel %vm649_vm2, %v1695_v59, 0.0  ;;  %v1696_v40 = vmul.f32 %v3370_v53, %v3370_v53 }
 0x526   : > { %v2101_v6 = vpop.f32.mrb[29].mxu0  ;;  %1720 = vadd.xlane.f32.xlu0 %v1719_v23 }
 0x527   : > { %v2102_v34 = vadd.f32 %v2101_v6, %v2100_v43  ;;  %v2103_v39 = vpop.f32.mrb[30].mxu0  ;;  %v1722_v22 = vsel %vm649_vm2, %v1696_v40, 0.0  ;;  %v1638_v43 = vpop.xlane.xlu1 %1637  ;;  %v1671_v40 = vmul.f32 %v1655_v18, %v1636_v38 }
 0x528   : > { %1723 = vadd.xlane.f32.xlu1 %v1722_v22  ;;  %v2104_v5 = vpop.f32.mrb[31].mxu0 }
 0x529   : > { %v3384_v30 = vsub.f32 %v2102_v34, %v1665_v49  ;;  %v2105_v28 = vadd.f32 %v2104_v5, %v2103_v39  ;;  %v1672_v34 = vmul.f32 %v1656_v21, %v1638_v43 }
 0x52b   : > { %v3386_v60 = vsub.f32 %v2105_v28, %v1666_v8  ;;  %v1697_v16 = vmul.f32 %v3384_v30, %v3384_v30  ;;  %v1657_v28 = vld [vmem:[%s3547_s5 + $0x70] sm:$0xff] }
 0x52d   : > { %v2106_v24 = vpop.f32.mrb[32].mxu0  ;;  %v1725_v10 = vsel %vm649_vm2, %v1697_v16, 0.0  ;;  %v1698_v61 = vmul.f32 %v3386_v60, %v3386_v60  ;;  %v1640_v16 = vpop.xlane.xlu0 %1639 }
 0x52e   : > { %v2107_v58 = vpop.f32.mrb[33].mxu0  ;;  %1726 = vadd.xlane.f32.xlu0 %v1725_v10  ;;  %v1658_v10 = vld [vmem:[%s3547_s5 + $0x78] sm:$0xff]  ;;  %v1673_v9 = vmul.f32 %v1657_v28, %v1640_v16 }
 0x52f   : > { %v2108_v33 = vadd.f32 %v2107_v58, %v2106_v24  ;;  %v2109_v13 = vpop.f32.mrb[34].mxu0  ;;  %v1728_v42 = vsel %vm649_vm2, %v1698_v61, 0.0  ;;  %v1642_v61 = vpop.xlane.xlu1 %1641 }
 0x530   : > { %1729 = vadd.xlane.f32.xlu1 %v1728_v42  ;;  %v2110_v44 = vpop.f32.mrb[35].mxu0  ;;  %v1674_v42 = vmul.f32 %v1658_v10, %v1642_v61 }
 0x531   : > { %v3400_v41 = vsub.f32 %v2108_v33, %v1667_v37  ;;  %v2111_v48 = vadd.f32 %v2110_v44, %v2109_v13 }
 0x533   : > { %v3402_v31 = vsub.f32 %v2111_v48, %v1668_v1  ;;  %v1699_v50 = vmul.f32 %v3400_v41, %v3400_v41 }
 0x535   : > { %v2112_v35 = vpop.f32.mrb[36].mxu0  ;;  %v1731_v63 = vsel %vm649_vm2, %v1699_v50, 0.0  ;;  %v1700_v52 = vmul.f32 %v3402_v31, %v3402_v31 }
 0x536   : > { %v2113_v51 = vpop.f32.mrb[37].mxu0  ;;  %1732 = vadd.xlane.f32.xlu0 %v1731_v63 }
 0x537   : > { %v2114_v17 = vadd.f32 %v2113_v51, %v2112_v35  ;;  %v2115_v62 = vpop.f32.mrb[38].mxu0  ;;  %v1734_v2 = vsel %vm649_vm2, %v1700_v52, 0.0 }
 0x538   : > { %1735 = vadd.xlane.f32.xlu1 %v1734_v2  ;;  %v2116_v3 = vpop.f32.mrb[39].mxu0 }
 0x539   : > { %v3416_v45 = vsub.f32 %v2114_v17, %v1669_v25  ;;  %v2117_v29 = vadd.f32 %v2116_v3, %v2115_v62 }
 0x53b   : > { %v3418_v0 = vsub.f32 %v2117_v29, %v1670_v47  ;;  %v1701_v54 = vmul.f32 %v3416_v45, %v3416_v45 }
 0x53d   : > { %v2118_v20 = vpop.f32.mrb[40].mxu0  ;;  %v1737_v59 = vsel %vm649_vm2, %v1701_v54, 0.0  ;;  %v1702_v4 = vmul.f32 %v3418_v0, %v3418_v0 }
 0x53e   : > { %v2119_v23 = vpop.f32.mrb[41].mxu0  ;;  %1738 = vadd.xlane.f32.xlu0 %v1737_v59 }
 0x53f   : > { %v2120_v7 = vadd.f32 %v2119_v23, %v2118_v20  ;;  %v2121_v27 = vpop.f32.mrb[42].mxu0  ;;  %v1740_v6 = vsel %vm649_vm2, %v1702_v4, 0.0 }
 0x540   : > { %1741 = vadd.xlane.f32.xlu1 %v1740_v6  ;;  %v2122_v49 = vpop.f32.mrb[43].mxu0 }
 0x541   : > { %v3432_v39 = vsub.f32 %v2120_v7, %v1671_v40  ;;  %v2123_v22 = vadd.f32 %v2122_v49, %v2121_v27 }
 0x543   : > { %v3434_v5 = vsub.f32 %v2123_v22, %v1672_v34  ;;  %v1703_v8 = vmul.f32 %v3432_v39, %v3432_v39 }
 0x545   : > { %v2124_v15 = vpop.f32.mrb[44].mxu0  ;;  %v1743_v14 = vsel %vm649_vm2, %v1703_v8, 0.0  ;;  %v1704_v24 = vmul.f32 %v3434_v5, %v3434_v5 }
 0x546   : > { %v2125_v46 = vpop.f32.mrb[45].mxu0  ;;  %1744 = vadd.xlane.f32.xlu0 %v1743_v14 }
 0x547   : > { %v2126_v58 = vadd.f32 %v2125_v46, %v2124_v15  ;;  %v2127_v37 = vpop.f32.mrb[46].mxu0  ;;  %v1746_v33 = vsel %vm649_vm2, %v1704_v24, 0.0 }
 0x548   : > { %1747 = vadd.xlane.f32.xlu1 %v1746_v33  ;;  %v2128_v13 = vpop.f32.mrb[47].mxu0 }
 0x549   : > { %v3448_v44 = vsub.f32 %v2126_v58, %v1673_v9  ;;  %v2129_v1 = vadd.f32 %v2128_v13, %v2127_v37 }
 0x54b   : > { %v3450_v48 = vsub.f32 %v2129_v1, %v1674_v42  ;;  %v1705_v50 = vmul.f32 %v3448_v44, %v3448_v44 }
 0x54d   : > { %v1749_v36 = vsel %vm649_vm2, %v1705_v50, 0.0  ;;  %v1706_v12 = vmul.f32 %v3450_v48, %v3450_v48 }
 0x54e   : > { %1750 = vadd.xlane.f32.xlu0 %v1749_v36 }
 0x54f   : > { %v1752_v35 = vsel %vm649_vm2, %v1706_v12, 0.0 }
 0x550   : > { %1753 = vadd.xlane.f32.xlu1 %v1752_v35 }
 0x5a3   : > { %v1709_v63 = vpop.xlane.xlu0 %1708 }
 0x5a4   : > { %v1755_v52 = vmax.f32 %v1709_v63, 1e-24 }
 0x5a5   : > { %v1712_v32 = vpop.xlane.xlu1 %1711 }
 0x5a6   : > { %2453 = vrsqrt.f32 %v1755_v52  ;;  %v1756_v11 = vmax.f32 %v1712_v32, 1e-24 }
 0x5a8   : > { %2455 = vrsqrt.f32 %v1756_v11 }
 0x5ab   : > { %v1715_v51 = vpop.xlane.xlu0 %1714 }
 0x5ac   : > { %v1757_v25 = vmax.f32 %v1715_v51, 1e-24 }
 0x5ad   : > { %v1718_v17 = vpop.xlane.xlu1 %1717 }
 0x5ae   : > { %2457 = vrsqrt.f32 %v1757_v25  ;;  %v1758_v62 = vmax.f32 %v1718_v17, 1e-24 }
 0x5b0   : > { %v2454_v2 = vpop.eup %2453  ;;  %2459 = vrsqrt.f32 %v1758_v62 }
 0x5b1   : > { %v3459_v3 = vmul.f32 %v2454_v2, %v3336_v26 }
 0x5b2   : > { %v2456_v47 = vpop.eup %2455 }
 0x5b3   : > { %v1721_v29 = vpop.xlane.xlu0 %1720  ;;  %v1803_v54 = vmul.f32 %v3459_v3, %v3459_v3  ;;  %v1788_v18 = vmul.f32 %v2456_v47, %v3338_v19 }
 0x5b4   : > { %v1759_v38 = vmax.f32 %v1721_v29, 1e-24 }
 0x5b5   : > { %v1724_v20 = vpop.xlane.xlu1 %1723  ;;  %v1819_v59 = vsel %vm649_vm2, %v1803_v54, 0.0  ;;  %v1804_v4 = vmul.f32 %v1788_v18, %v1788_v18 }
 0x5b6   : > { %2461 = vrsqrt.f32 %v1759_v38  ;;  %v1760_v21 = vmax.f32 %v1724_v20, 1e-24  ;;  %1820 = vadd.xlane.f32.xlu0 %v1819_v59 }
 0x5b7   : > { %v1822_v43 = vsel %vm649_vm2, %v1804_v4, 0.0 }
 0x5b8   : > { %v2458_v23 = vpop.eup %2457  ;;  %2463 = vrsqrt.f32 %v1760_v21  ;;  %1823 = vadd.xlane.f32.xlu1 %v1822_v43 }
 0x5b9   : > { %v1789_v26 = vmul.f32 %v2458_v23, %v3352_v55 }
 0x5ba   : > { %v2460_v40 = vpop.eup %2459 }
 0x5bb   : > { %v1727_v7 = vpop.xlane.xlu0 %1726  ;;  %v1805_v27 = vmul.f32 %v1789_v26, %v1789_v26  ;;  %v1790_v19 = vmul.f32 %v2460_v40, %v3354_v57 }
 0x5bc   : > { %v1761_v6 = vmax.f32 %v1727_v7, 1e-24 }
 0x5bd   : > { %v1730_v49 = vpop.xlane.xlu1 %1729  ;;  %v1825_v34 = vsel %vm649_vm2, %v1805_v27, 0.0  ;;  %v1806_v22 = vmul.f32 %v1790_v19, %v1790_v19 }
 0x5be   : > { %2465 = vrsqrt.f32 %v1761_v6  ;;  %v1762_v8 = vmax.f32 %v1730_v49, 1e-24  ;;  %1826 = vadd.xlane.f32.xlu0 %v1825_v34 }
 0x5bf   : > { %v1828_v28 = vsel %vm649_vm2, %v1806_v22, 0.0 }
 0x5c0   : > { %v2462_v16 = vpop.eup %2461  ;;  %2467 = vrsqrt.f32 %v1762_v8  ;;  %1829 = vadd.xlane.f32.xlu1 %v1828_v28 }
 0x5c1   : > { %v1791_v55 = vmul.f32 %v2462_v16, %v3368_v56 }
 0x5c2   : > { %v2464_v15 = vpop.eup %2463 }
 0x5c3   : > { %v1733_v14 = vpop.xlane.xlu0 %1732  ;;  %v1807_v24 = vmul.f32 %v1791_v55, %v1791_v55  ;;  %v1792_v57 = vmul.f32 %v2464_v15, %v3370_v53 }
 0x5c4   : > { %v1763_v10 = vmax.f32 %v1733_v14, 1e-24 }
 0x5c5   : > { %v1736_v61 = vpop.xlane.xlu1 %1735  ;;  %v1831_v46 = vsel %vm649_vm2, %v1807_v24, 0.0  ;;  %v1808_v9 = vmul.f32 %v1792_v57, %v1792_v57 }
 0x5c6   : > { %2469 = vrsqrt.f32 %v1763_v10  ;;  %v1764_v58 = vmax.f32 %v1736_v61, 1e-24  ;;  %1832 = vadd.xlane.f32.xlu0 %v1831_v46 }
 0x5c7   : > { %v1834_v37 = vsel %vm649_vm2, %v1808_v9, 0.0 }
 0x5c8   : > { %v2466_v33 = vpop.eup %2465  ;;  %2471 = vrsqrt.f32 %v1764_v58  ;;  %1835 = vadd.xlane.f32.xlu1 %v1834_v37 }
 0x5c9   : > { %v1793_v56 = vmul.f32 %v2466_v33, %v3384_v30 }
 0x5ca   : > { %v2468_v13 = vpop.eup %2467 }
 0x5cb   : > { %v1739_v42 = vpop.xlane.xlu0 %1738  ;;  %v1809_v1 = vmul.f32 %v1793_v56, %v1793_v56  ;;  %v1794_v53 = vmul.f32 %v2468_v13, %v3386_v60 }
 0x5cc   : > { %v1765_v50 = vmax.f32 %v1739_v42, 1e-24 }
 0x5cd   : > { %v1742_v36 = vpop.xlane.xlu1 %1741  ;;  %v1837_v12 = vsel %vm649_vm2, %v1809_v1, 0.0  ;;  %v1810_v35 = vmul.f32 %v1794_v53, %v1794_v53 }
 0x5ce   : > { %2473 = vrsqrt.f32 %v1765_v50  ;;  %v1766_v63 = vmax.f32 %v1742_v36, 1e-24  ;;  %1838 = vadd.xlane.f32.xlu0 %v1837_v12 }
 0x5cf   : > { %v1840_v52 = vsel %vm649_vm2, %v1810_v35, 0.0 }
 0x5d0   : > { %v2470_v32 = vpop.eup %2469  ;;  %2475 = vrsqrt.f32 %v1766_v63  ;;  %1841 = vadd.xlane.f32.xlu1 %v1840_v52 }
 0x5d1   : > { %v1795_v30 = vmul.f32 %v2470_v32, %v3400_v41 }
 0x5d2   : > { %v2472_v11 = vpop.eup %2471 }
 0x5d3   : > { %v1745_v51 = vpop.xlane.xlu0 %1744  ;;  %v1811_v25 = vmul.f32 %v1795_v30, %v1795_v30  ;;  %v1796_v60 = vmul.f32 %v2472_v11, %v3402_v31 }
 0x5d4   : > { %v1767_v17 = vmax.f32 %v1745_v51, 1e-24 }
 0x5d5   : > { %v1748_v62 = vpop.xlane.xlu1 %1747  ;;  %v1843_v2 = vsel %vm649_vm2, %v1811_v25, 0.0  ;;  %v1812_v47 = vmul.f32 %v1796_v60, %v1796_v60 }
 0x5d6   : > { %2477 = vrsqrt.f32 %v1767_v17  ;;  %v1768_v29 = vmax.f32 %v1748_v62, 1e-24  ;;  %1844 = vadd.xlane.f32.xlu0 %v1843_v2 }
 0x5d7   : > { %v1846_v54 = vsel %vm649_vm2, %v1812_v47, 0.0 }
 0x5d8   : > { %v2474_v18 = vpop.eup %2473  ;;  %2479 = vrsqrt.f32 %v1768_v29  ;;  %1847 = vadd.xlane.f32.xlu1 %v1846_v54 }
 0x5d9   : > { %v1797_v41 = vmul.f32 %v2474_v18, %v3416_v45 }
 0x5da   : > { %v2476_v38 = vpop.eup %2475 }
 0x5db   : > { %v1751_v20 = vpop.xlane.xlu0 %1750  ;;  %v1813_v59 = vmul.f32 %v1797_v41, %v1797_v41  ;;  %v1798_v31 = vmul.f32 %v2476_v38, %v3418_v0 }
 0x5dc   : > { %v1769_v4 = vmax.f32 %v1751_v20, 1e-24 }
 0x5dd   : > { %v1754_v21 = vpop.xlane.xlu1 %1753  ;;  %v1849_v43 = vsel %vm649_vm2, %v1813_v59, 0.0  ;;  %v1814_v23 = vmul.f32 %v1798_v31, %v1798_v31 }
 0x5de   : > { %2481 = vrsqrt.f32 %v1769_v4  ;;  %v1770_v26 = vmax.f32 %v1754_v21, 1e-24  ;;  %1850 = vadd.xlane.f32.xlu0 %v1849_v43 }
 0x5df   : > { %v1852_v40 = vsel %vm649_vm2, %v1814_v23, 0.0 }
 0x5e0   : > { %v2478_v7 = vpop.eup %2477  ;;  %2483 = vrsqrt.f32 %v1770_v26  ;;  %1853 = vadd.xlane.f32.xlu1 %v1852_v40 }
 0x5e1   : > { %v1799_v45 = vmul.f32 %v2478_v7, %v3432_v39 }
 0x5e2   : > { %v2480_v27 = vpop.eup %2479 }
 0x5e3   : > { %v1815_v19 = vmul.f32 %v1799_v45, %v1799_v45  ;;  %v1800_v6 = vmul.f32 %v2480_v27, %v3434_v5 }
 0x5e5   : > { %v1855_v0 = vsel %vm649_vm2, %v1815_v19, 0.0  ;;  %v1816_v49 = vmul.f32 %v1800_v6, %v1800_v6 }
 0x5e6   : > { %1856 = vadd.xlane.f32.xlu0 %v1855_v0 }
 0x5e7   : > { %v1858_v34 = vsel %vm649_vm2, %v1816_v49, 0.0 }
 0x5e8   : > { %v2482_v22 = vpop.eup %2481  ;;  %1859 = vadd.xlane.f32.xlu1 %v1858_v34 }
 0x5e9   : > { %v1801_v8 = vmul.f32 %v2482_v22, %v3448_v44 }
 0x5ea   : > { %v2484_v28 = vpop.eup %2483 }
 0x5eb   : > { %v1817_v16 = vmul.f32 %v1801_v8, %v1801_v8  ;;  %v1802_v55 = vmul.f32 %v2484_v28, %v3450_v48 }
 0x5ed   : > { %v1861_v39 = vsel %vm649_vm2, %v1817_v16, 0.0  ;;  %v1818_v15 = vmul.f32 %v1802_v55, %v1802_v55 }
 0x5ee   : > { %1862 = vadd.xlane.f32.xlu0 %v1861_v39 }
 0x5ef   : > { %v1864_v5 = vsel %vm649_vm2, %v1818_v15, 0.0  ;;  %vm1892_vm2 = vcmask 257024  }
 0x5f0   : > { %1865 = vadd.xlane.f32.xlu1 %v1864_v5 }
 0x643   : > { %v1821_v14 = vpop.xlane.xlu0 %1820 }
 0x645   : > { %v1824_v24 = vpop.xlane.xlu1 %1823 }
 0x646   : > { %v1867_v10 = vadd.f32 %v1824_v24, %v1821_v14 }
 0x64b   : > { %v1827_v57 = vpop.xlane.xlu0 %1826 }
 0x64c   : > { %v1868_v61 = vadd.f32 %v1867_v10, %v1827_v57 }
 0x64d   : > { %v1830_v46 = vpop.xlane.xlu1 %1829 }
 0x64e   : > { %v1869_v58 = vadd.f32 %v1868_v61, %v1830_v46 }
 0x653   : > { %v1833_v9 = vpop.xlane.xlu0 %1832 }
 0x654   : > { %v1870_v44 = vadd.f32 %v1869_v58, %v1833_v9 }
 0x655   : > { %v1836_v37 = vpop.xlane.xlu1 %1835 }
 0x656   : > { %v1871_v56 = vadd.f32 %v1870_v44, %v1836_v37 }
 0x65b   : > { %v1839_v33 = vpop.xlane.xlu0 %1838 }
 0x65c   : > { %v1872_v48 = vadd.f32 %v1871_v56, %v1839_v33 }
 0x65d   : > { %v1842_v13 = vpop.xlane.xlu1 %1841 }
 0x65e   : > { %v1873_v1 = vadd.f32 %v1872_v48, %v1842_v13 }
 0x663   : > { %v1845_v42 = vpop.xlane.xlu0 %1844 }
 0x664   : > { %v1874_v53 = vadd.f32 %v1873_v1, %v1845_v42 }
 0x665   : > { %v1848_v50 = vpop.xlane.xlu1 %1847 }
 0x666   : > { %v1875_v12 = vadd.f32 %v1874_v53, %v1848_v50 }
 0x66b   : > { %v1851_v36 = vpop.xlane.xlu0 %1850 }
 0x66c   : > { %v1876_v35 = vadd.f32 %v1875_v12, %v1851_v36 }
 0x66d   : > { %v1854_v63 = vpop.xlane.xlu1 %1853 }
 0x66e   : > { %v1877_v32 = vadd.f32 %v1876_v35, %v1854_v63 }
 0x673   : > { %v1857_v52 = vpop.xlane.xlu0 %1856 }
 0x674   : > { %v1878_v30 = vadd.f32 %v1877_v32, %v1857_v52 }
 0x675   : > { %v1860_v11 = vpop.xlane.xlu1 %1859 }
 0x676   : > { %v1879_v51 = vadd.f32 %v1878_v30, %v1860_v11 }
 0x67b   : > { %v1863_v25 = vpop.xlane.xlu0 %1862 }
 0x67c   : > { %v1880_v60 = vadd.f32 %v1879_v51, %v1863_v25 }
 0x67d   : > { %v1866_v17 = vpop.xlane.xlu1 %1865 }
 0x67e   : > { %v1881_v62 = vadd.f32 %v1880_v60, %v1866_v17 }
 0x680   : > { %v1882_v2 = vrot.slane %v1881_v62, 4 }
 0x682   : > { %v1883_v47 = vadd.f32 %v1882_v2, %v1881_v62 }
 0x684   : > { %v1884_v29 = vrot.slane %v1883_v47, 2 }
 0x686   : > { %v1885_v54 = vadd.f32 %v1884_v29, %v1883_v47 }
 0x688   : > { %v1886_v18 = vrot.slane %v1885_v54, 1 }
 0x68a   : > { %v1887_v41 = vadd.f32 %v1886_v18, %v1885_v54 }
 0x68c   : > { %v1888_v38 = vmax.f32 %v1887_v41, 1e-24 }
 0x68e   : > { %2485 = vrsqrt.f32 %v1888_v38 }
 0x698   : > { %v2486_v20 = vpop.eup %2485 }
 0x699   : > { %v1890_v59 = vmul.f32 %v2486_v20, %v3459_v3 }
 0x69b   : > { %v1891_v31 = vpack.c.bf16 %v1890_v59, %v1890_v59 }
 0x69d   : > { %1893 = vst.msk [vmem:[%s244_s14] sm:$0xf] %vm1892_vm2, %v1891_v31 }
 0x69e   : > { %2500 = shalt.err (!%p2497_p3)
}
 0x69f   : > { %s2501_s29 = scalar_lea.hbm %s3500_s18, 64  ;;  %s2505_s11 = scalar_lea.hbm %s3548_s6, 128 }
 0x6a0   : > { %p2502_p4 = scmp.ne.s32.totalorder %s3500_s18, %s2501_s29  ;;  %p2506_p9 = scmp.lt.u32.totalorder %s3500_s18, %s3548_s6 }
 0x6a1   : > { %p2507_p10 = scmp.lt.u32.totalorder %s2505_s11, %s2501_s29  ;;  %p2509_p12 = scmp.lt.u32.totalorder %s2501_s29, %s3500_s18 }
 0x6a2   : > { %p2503_p7 = pnand %p2502_p4, %p2625_p5 }
 0x6a3   : > { %p2508_p11 = por %p2507_p10, %p2506_p9 }
 0x6a4   : > { %p2504_p8 = pneg %p2503_p7 }
 0x6a5   : > { %p2510_p13 = por %p2509_p12, %p2508_p11 }
 0x6a7   : > { %p2511_p0 = pnand %p2510_p13, %p2504_p8 }
 0x6a9   : > { %2514 = shalt.err (!%p2511_p0)
}
 0x6aa   : > { %2204 = dma.vmem_to_hbm [thread:$0]  (%p2625_p5), %s3502_s15, 64, %s3500_s18, %s1895_s19  }
 0x6ab PF: > { %p2210_p1 = scmp.ge.s32.totalorder %s2549_s24, 2  ;;  %s1920_s14 = sand.u32 1, %s2537_s21  }
 0x6ac   : > { %s1921_s16 = scalar_lea.sflag [#allocation3], %s1920_s14 }
 0x6ad   : > { %p2207_p2 = pnand %p2210_p1, %p2629_p6 }
 0x6af   : > { %2532 = dma.done.wait (!%p2207_p2), %s1921_s16, 64  }
 0x6b0   : > { %2534 = vsyncadd (!%p2207_p2), %s1921_s16, 4294967232  ;;  %p16_p3 = scmp.ge.s32.totalorder %s2612_s27, 4   ;;  %s3551_s21 = smov %s2541_s22 }
 0x6b1   : > { %s3552_s22 = smov %s2545_s23  ;;  %s3553_s23 = smov %s2623_s30 }
 0x6b2   : > { %s3554_s24 = smov %s2612_s27  ;;  %18 = sbr.rel (!%p16_p3) target bundleno = 3 (0x3), region = 79 }
 0x6b9   :  { %1926 = vsyncpa [#allocation3], 1 }
 0x6ba   :  { %1928 = vsyncpa [#allocation3 + $0x1], 1 }

</bundles_post_ra>
